<compile_context>
chip_gen: v5e
topology: v5e:2x2
jax: 0.10.0
libtpu: 0.0.40
codegen_flags: <defaults>
</compile_context>

<pallas_src>
import functools

import jax
import jax.numpy as jnp
from jax.experimental import pallas as pl
from jax.experimental.pallas import tpu as pltpu


def _round_up(x, m):
    return ((x + m - 1) // m) * m


def _pnet_mlp_kernel(x_ref, w1_ref, b1_ref, w2_ref, b2_ref, w3_ref, b3_ref,
                     mu_ref):
    # Linear(dim_state, 1024) + ReLU  (bf16 operands, f32 accumulate)
    h1 = jnp.dot(x_ref[...], w1_ref[...], preferred_element_type=jnp.float32)
    h1 = jnp.maximum(h1 + b1_ref[...], 0.0)
    # Linear(1024, 512) + ReLU
    h2 = jnp.dot(h1.astype(jnp.bfloat16), w2_ref[...],
                 preferred_element_type=jnp.float32)
    h2 = jnp.maximum(h2 + b2_ref[...], 0.0)
    # Linear(512, dim_action_padded)
    mu = jnp.dot(h2.astype(jnp.bfloat16), w3_ref[...],
                 preferred_element_type=jnp.float32)
    mu_ref[...] = (mu + b3_ref[...]).astype(mu_ref.dtype)


@functools.partial(jax.jit, static_argnames=("block_b",))
def pnet_forward(x, params, sigma, *, block_b=256):
    """Returns (mu, covariance) — the parameters of MultivariateNormal(mu, sigma).

    block_b: batch tile size.  256 is a good default for v6e/v7x; use 128 on
    v5e.  Tiny batches shrink the tile automatically (one grid step).
    """
    w1, b1, w2, b2, w3, b3 = params
    B, dim_state = x.shape
    h1_dim = w1.shape[1]
    h2_dim = w2.shape[1]
    dim_action = w3.shape[1]

    # --- Lane-dense output: pad dim_action up to a multiple of 128 lanes. ---
    n_pad = max(128, _round_up(dim_action, 128))
    if n_pad != dim_action:
        w3 = jnp.zeros((h2_dim, n_pad), w3.dtype).at[:, :dim_action].set(w3)
        b3 = jnp.zeros((1, n_pad), b3.dtype).at[:, :dim_action].set(b3)

    # --- Batch tiling: TB multiple of 8 (sublane packing), B padded to TB. ---
    tb = min(block_b, max(8, _round_up(B, 8)))
    tb = _round_up(tb, 8)
    b_pad = _round_up(B, tb)
    if b_pad != B:
        x = jnp.pad(x, ((0, b_pad - B), (0, 0)))
    num_blocks = b_pad // tb

    # --- bf16 matmul operands; biases / accumulation / activations stay f32. ---
    xb = x.astype(jnp.bfloat16)
    w1b = w1.astype(jnp.bfloat16)
    w2b = w2.astype(jnp.bfloat16)
    w3b = w3.astype(jnp.bfloat16)
    b1f = b1.astype(jnp.float32)
    b2f = b2.astype(jnp.float32)
    b3f = b3.astype(jnp.float32)

    mu_padded = pl.pallas_call(
        _pnet_mlp_kernel,
        out_shape=jax.ShapeDtypeStruct((b_pad, n_pad), jnp.float32),
        grid=(num_blocks,),
        in_specs=[
            # Streamed per grid step (double-buffered by the pipeline).
            pl.BlockSpec((tb, dim_state), lambda i: (i, 0)),
            # Weights / biases: same block every step -> VMEM-resident.
            pl.BlockSpec((dim_state, h1_dim), lambda i: (0, 0)),
            pl.BlockSpec((1, h1_dim), lambda i: (0, 0)),
            pl.BlockSpec((h1_dim, h2_dim), lambda i: (0, 0)),
            pl.BlockSpec((1, h2_dim), lambda i: (0, 0)),
            pl.BlockSpec((h2_dim, n_pad), lambda i: (0, 0)),
            pl.BlockSpec((1, n_pad), lambda i: (0, 0)),
        ],
        out_specs=pl.BlockSpec((tb, n_pad), lambda i: (i, 0)),
        compiler_params=pltpu.CompilerParams(
            # Batch axis is independent -> shard across v7x's 2 TensorCores.
            dimension_semantics=("parallel",),
        ),
    )(xb, w1b, b1f, w2b, b2f, w3b, b3f)

    mu = mu_padded[:B, :dim_action]

    # TODO(synk): MultivariateNormal distribution object has no Pallas
    # equivalent; return its parameters (mean, covariance) instead.
    return mu, sigma


def init_pnet_params(key, dim_state, dim_action, scale=0.01):
    """Deterministic uniform(-0.1, 0.1) init, matching init_weights()."""
    h1, h2 = 1024, 512
    keys = jax.random.split(key, 6)

    def u(k, shape):
        return jax.random.uniform(k, shape, jnp.float32, -0.1, 0.1)

    # Weights stored as (in, out) so the kernel computes x @ W + b.
    w1 = u(keys[0], (dim_state, h1))
    b1 = u(keys[1], (1, h1))
    w2 = u(keys[2], (h1, h2))
    b2 = u(keys[3], (1, h2))
    w3 = u(keys[4], (h2, dim_action))
    b3 = u(keys[5], (1, dim_action))
    sigma = scale * jnp.eye(dim_action, dtype=jnp.float32)
    return (w1, b1, w2, b2, w3, b3), sigma


if __name__ == "__main__":
    key = jax.random.PRNGKey(0)
    dim_state, dim_action, batch = 32, 8, 4

    pkey, xkey = jax.random.split(key)
    params, sigma = init_pnet_params(pkey, dim_state, dim_action, scale=0.01)
    x = jax.random.normal(xkey, (batch, dim_state), jnp.float32)

    # NOTE: for rollout loops at tiny B, batch many states per call — the
    # kernel itself is launch/DMA-bound at B=4 no matter how it is written.
    mu, cov = pnet_forward(x, params, sigma)
    jax.block_until_ready((mu, cov))

    # Pure-JAX f32 reference of the MLP hot path (kernel uses bf16 matmul
    # operands with f32 accumulation, so tolerances are relaxed).
    w1, b1, w2, b2, w3, b3 = params
    ref = jnp.maximum(x @ w1 + b1, 0.0)
    ref = jnp.maximum(ref @ w2 + b2, 0.0)
    ref = ref @ w3 + b3
    assert mu.shape == (batch, dim_action)
    assert cov.shape == (dim_action, dim_action)
    assert jnp.allclose(mu, ref, atol=2e-2, rtol=2e-2), (
        f"max abs err {jnp.max(jnp.abs(mu - ref))}")

    # Also sanity-check a larger, tile-spanning batch (exercises the grid and
    # the non-multiple-of-TB padding path).
    big_b = 300
    xb = jax.random.normal(jax.random.PRNGKey(1), (big_b, dim_state), jnp.float32)
    mu_b, _ = pnet_forward(xb, params, sigma)
    jax.block_until_ready(mu_b)
    ref_b = jnp.maximum(xb @ w1 + b1, 0.0)
    ref_b = jnp.maximum(ref_b @ w2 + b2, 0.0)
    ref_b = ref_b @ w3 + b3
    assert mu_b.shape == (big_b, dim_action)
    assert jnp.allclose(mu_b, ref_b, atol=2e-2, rtol=2e-2), (
        f"max abs err {jnp.max(jnp.abs(mu_b - ref_b))}")

    print("KERNEL_OK")
</pallas_src>

<mosaic_0001>
module attributes {stable_mosaic.version = 11 : i64} {
  func.func @_pnet_mlp_kernel(%arg0: i32, %arg1: memref<8x32xbf16, #tpu.memory_space<vmem>>, %arg2: memref<32x1024xbf16, #tpu.memory_space<vmem>>, %arg3: memref<1x1024xf32, #tpu.memory_space<vmem>>, %arg4: memref<1024x512xbf16, #tpu.memory_space<vmem>>, %arg5: memref<1x512xf32, #tpu.memory_space<vmem>>, %arg6: memref<512x128xbf16, #tpu.memory_space<vmem>>, %arg7: memref<1x128xf32, #tpu.memory_space<vmem>>, %arg8: memref<8x128xf32, #tpu.memory_space<vmem>>) attributes {dimension_semantics = [#tpu.dimension_semantics<parallel>], iteration_bounds = array<i64: 1>, scalar_prefetch = 0 : i64, scratch_operands = 0 : i64, tpu.core_type = #tpu.core_type<tc>, window_params = [{transform_indices = @transform_0, window_bounds = array<i64: 8, 32>}, {pipeline_mode = #tpu.pipeline_mode<synchronous>, transform_indices = @transform_1, window_bounds = array<i64: 32, 1024>}, {pipeline_mode = #tpu.pipeline_mode<synchronous>, transform_indices = @transform_2, window_bounds = array<i64: 1, 1024>}, {pipeline_mode = #tpu.pipeline_mode<synchronous>, transform_indices = @transform_3, window_bounds = array<i64: 1024, 512>}, {pipeline_mode = #tpu.pipeline_mode<synchronous>, transform_indices = @transform_4, window_bounds = array<i64: 1, 512>}, {pipeline_mode = #tpu.pipeline_mode<synchronous>, transform_indices = @transform_5, window_bounds = array<i64: 512, 128>}, {pipeline_mode = #tpu.pipeline_mode<synchronous>, transform_indices = @transform_6, window_bounds = array<i64: 1, 128>}, {transform_indices = @transform_7, window_bounds = array<i64: 8, 128>}]} {
    %c0 = arith.constant 0 : index
    %c0_0 = arith.constant 0 : index
    %0 = vector.load %arg1[%c0, %c0_0] : memref<8x32xbf16, #tpu.memory_space<vmem>>, vector<8x32xbf16>
    %c0_1 = arith.constant 0 : index
    %c0_2 = arith.constant 0 : index
    %1 = vector.load %arg2[%c0_1, %c0_2] : memref<32x1024xbf16, #tpu.memory_space<vmem>>, vector<32x1024xbf16>
    %cst = arith.constant dense<0.000000e+00> : vector<8x1024xf32>
    %2 = tpu.matmul %0, %1, %cst {dimension_numbers = #tpu.dot_dimension_numbers<[1], [0], [0], [1], [0, 0, 1, 1], [], []>} : vector<8x32xbf16>, vector<32x1024xbf16>, vector<8x1024xf32> -> vector<8x1024xf32>
    %c0_3 = arith.constant 0 : index
    %c0_4 = arith.constant 0 : index
    %3 = vector.load %arg3[%c0_3, %c0_4] : memref<1x1024xf32, #tpu.memory_space<vmem>>, vector<1x1024xf32>
    %4 = vector.broadcast %3 : vector<1x1024xf32> to vector<8x1024xf32>
    %5 = arith.addf %2, %4 : vector<8x1024xf32>
    %cst_5 = arith.constant 0.000000e+00 : f32
    %6 = vector.broadcast %cst_5 : f32 to vector<8x1024xf32>
    %7 = arith.maximumf %5, %6 : vector<8x1024xf32>
    %8 = arith.truncf %7 : vector<8x1024xf32> to vector<8x1024xbf16>
    %c0_6 = arith.constant 0 : index
    %c0_7 = arith.constant 0 : index
    %9 = vector.load %arg4[%c0_6, %c0_7] : memref<1024x512xbf16, #tpu.memory_space<vmem>>, vector<1024x512xbf16>
    %cst_8 = arith.constant dense<0.000000e+00> : vector<8x512xf32>
    %10 = tpu.matmul %8, %9, %cst_8 {dimension_numbers = #tpu.dot_dimension_numbers<[1], [0], [0], [1], [0, 0, 1, 1], [], []>} : vector<8x1024xbf16>, vector<1024x512xbf16>, vector<8x512xf32> -> vector<8x512xf32>
    %c0_9 = arith.constant 0 : index
    %c0_10 = arith.constant 0 : index
    %11 = vector.load %arg5[%c0_9, %c0_10] : memref<1x512xf32, #tpu.memory_space<vmem>>, vector<1x512xf32>
    %12 = vector.broadcast %11 : vector<1x512xf32> to vector<8x512xf32>
    %13 = arith.addf %10, %12 : vector<8x512xf32>
    %cst_11 = arith.constant 0.000000e+00 : f32
    %14 = vector.broadcast %cst_11 : f32 to vector<8x512xf32>
    %15 = arith.maximumf %13, %14 : vector<8x512xf32>
    %16 = arith.truncf %15 : vector<8x512xf32> to vector<8x512xbf16>
    %c0_12 = arith.constant 0 : index
    %c0_13 = arith.constant 0 : index
    %17 = vector.load %arg6[%c0_12, %c0_13] : memref<512x128xbf16, #tpu.memory_space<vmem>>, vector<512x128xbf16>
    %cst_14 = arith.constant dense<0.000000e+00> : vector<8x128xf32>
    %18 = tpu.matmul %16, %17, %cst_14 {dimension_numbers = #tpu.dot_dimension_numbers<[1], [0], [0], [1], [0, 0, 1, 1], [], []>} : vector<8x512xbf16>, vector<512x128xbf16>, vector<8x128xf32> -> vector<8x128xf32>
    %c0_15 = arith.constant 0 : index
    %c0_16 = arith.constant 0 : index
    %19 = vector.load %arg7[%c0_15, %c0_16] : memref<1x128xf32, #tpu.memory_space<vmem>>, vector<1x128xf32>
    %20 = vector.broadcast %19 : vector<1x128xf32> to vector<8x128xf32>
    %21 = arith.addf %18, %20 : vector<8x128xf32>
    %c0_17 = arith.constant 0 : index
    %c0_18 = arith.constant 0 : index
    %22 = vector.load %arg8[%c0_17, %c0_18] : memref<8x128xf32, #tpu.memory_space<vmem>>, vector<8x128xf32>
    tpu.vector_store %arg8[%c0_17, %c0_18], %21 {strides = array<i32>} : memref<8x128xf32, #tpu.memory_space<vmem>>, vector<8x128xf32>,
    return
  }
  func.func @transform_0(%arg0: i32) -> (i32, i32) {
    %c0_i32 = arith.constant 0 : i32
    %c0_i32_0 = arith.constant 0 : i32
    return %arg0, %c0_i32 : i32, i32
  }
  func.func @transform_1(%arg0: i32) -> (i32, i32) {
    %c0_i32 = arith.constant 0 : i32
    %c0_i32_0 = arith.constant 0 : i32
    %c0_i32_1 = arith.constant 0 : i32
    return %c0_i32, %c0_i32_0 : i32, i32
  }
  func.func @transform_2(%arg0: i32) -> (i32, i32) {
    %c0_i32 = arith.constant 0 : i32
    %c0_i32_0 = arith.constant 0 : i32
    %c0_i32_1 = arith.constant 0 : i32
    return %c0_i32, %c0_i32_0 : i32, i32
  }
  func.func @transform_3(%arg0: i32) -> (i32, i32) {
    %c0_i32 = arith.constant 0 : i32
    %c0_i32_0 = arith.constant 0 : i32
    %c0_i32_1 = arith.constant 0 : i32
    return %c0_i32, %c0_i32_0 : i32, i32
  }
  func.func @transform_4(%arg0: i32) -> (i32, i32) {
    %c0_i32 = arith.constant 0 : i32
    %c0_i32_0 = arith.constant 0 : i32
    %c0_i32_1 = arith.constant 0 : i32
    return %c0_i32, %c0_i32_0 : i32, i32
  }
  func.func @transform_5(%arg0: i32) -> (i32, i32) {
    %c0_i32 = arith.constant 0 : i32
    %c0_i32_0 = arith.constant 0 : i32
    %c0_i32_1 = arith.constant 0 : i32
    return %c0_i32, %c0_i32_0 : i32, i32
  }
  func.func @transform_6(%arg0: i32) -> (i32, i32) {
    %c0_i32 = arith.constant 0 : i32
    %c0_i32_0 = arith.constant 0 : i32
    %c0_i32_1 = arith.constant 0 : i32
    return %c0_i32, %c0_i32_0 : i32, i32
  }
  func.func @transform_7(%arg0: i32) -> (i32, i32) {
    %c0_i32 = arith.constant 0 : i32
    %c0_i32_0 = arith.constant 0 : i32
    return %arg0, %c0_i32 : i32, i32
  }
}

</mosaic_0001>

<bundles_post_ra>
// kernel: pnet_forward.1
= control target key start
LH: loop header
LB: loop body
LE: loop exit
PB: predicated region body
PF: predicated region fallthrough
CT: control target
= control target key end

     0   :  { %vm142_vm0 = vcmask 261120   ;;  %s5977_s1 = inlined_call_operand.vmem [shape: bf16[32,1024], index: 1, kind: input, shape index: {}]   ;;  %s5978_s0 = inlined_call_operand.vmem [shape: bf16[8,32], index: 0, kind: input, shape index: {}]   ;;  %s5979_s3 = inlined_call_operand.vmem [shape: bf16[1024,512], index: 3, kind: input, shape index: {}]   ;;  %s5980_s2 = inlined_call_operand.vmem [shape: f32[1,1024], index: 2, kind: input, shape index: {}]   ;;  %s5981_s4 = inlined_call_operand.vmem [shape: f32[1,512], index: 4, kind: input, shape index: {}]   ;;  %s5982_s5 = inlined_call_operand.vmem [shape: bf16[512,128], index: 5, kind: input, shape index: {}]   ;;  %s5983_s6 = inlined_call_operand.vmem [shape: f32[1,128], index: 6, kind: input, shape index: {}]   ;;  %s5984_s7 = inlined_call_operand.vmem [shape: f32[8,128], index: 7, kind: output, shape index: {}]  }
   0x1   :  { %v2587_v0 = vld [vmem:[%s5977_s1 + $0x40] sm:$0xf]  ;;  %v3785_v2 = vld [vmem:[%s5977_s1 + $0x44] sm:$0xf]  ;;  %v2595_v5 = vld [vmem:[%s5977_s1 + $0x48] sm:$0xf] }
   0x2   :  { %v3789_v1 = vld [vmem:[%s5977_s1 + $0x5c] sm:$0xf0]  ;;  %v2589_v4 = vld [vmem:[%s5977_s1 + $0x60] sm:$0xf0]  ;;  %v3790_v6 = vld [vmem:[%s5977_s1 + $0x64] sm:$0xf0] }
   0x3   :  { %v2588_v3 = vor.u32 %v3789_v1, %v2587_v0  ;;  %v2592_v7 = vor.u32 %v3785_v2, %v2589_v4  ;;  %v2596_v8 = vor.u32 %v3790_v6, %v2595_v5  ;;  %v3786_v9 = vld [vmem:[%s5977_s1 + $0x4c] sm:$0xf]  ;;  %v2555_v11 = vld [vmem:[%s5977_s1] sm:$0xf]  ;;  %v3777_v14 = vld [vmem:[%s5977_s1 + $0x4] sm:$0xf] }
   0x4   :  { %v2597_v10 = vld [vmem:[%s5977_s1 + $0x68] sm:$0xf0]  ;;  %v3781_v13 = vld [vmem:[%s5977_s1 + $0x1c] sm:$0xf0]  ;;  %v2557_v15 = vld [vmem:[%s5977_s1 + $0x20] sm:$0xf0] }
   0x5   :  { %152 = vmatpush.bf16.msra.mxu0 %v2588_v3  ;;  %v2600_v12 = vor.u32 %v3786_v9, %v2597_v10  ;;  %165 = vmatpush.bf16.msra.mxu1 %v2592_v7  ;;  %v2556_v16 = vor.u32 %v3781_v13, %v2555_v11  ;;  %v2560_v17 = vor.u32 %v3777_v14, %v2557_v15  ;;  %v2563_v18 = vld [vmem:[%s5977_s1 + $0x8] sm:$0xf]  ;;  %v3778_v20 = vld [vmem:[%s5977_s1 + $0xc] sm:$0xf]  ;;  %v4173_v23 = vld [vmem:[%s5978_s0] sm:$0xf] }
   0x6   :  { %178 = vmatpush.bf16.msra.mxu2 %v2596_v8  ;;  %v3782_v19 = vld [vmem:[%s5977_s1 + $0x24] sm:$0xf0]  ;;  %v2565_v22 = vld [vmem:[%s5977_s1 + $0x28] sm:$0xf0]  ;;  %v2603_v24 = vld [vmem:[%s5977_s1 + $0x50] sm:$0xf] }
   0x7   :  { %191 = vmatpush.bf16.msra.mxu3 %v2600_v12  ;;  %v2564_v21 = vor.u32 %v3782_v19, %v2563_v18  ;;  %v2568_v25 = vor.u32 %v3778_v20, %v2565_v22  ;;  %v3791_v26 = vld [vmem:[%s5977_s1 + $0x6c] sm:$0xf0]  ;;  %v3787_v27 = vld [vmem:[%s5977_s1 + $0x54] sm:$0xf]  ;;  %v2611_v31 = vld [vmem:[%s5977_s1 + $0x58] sm:$0xf] }
   0x8   :  { %v2605_v28 = vld [vmem:[%s5977_s1 + $0x70] sm:$0xf0]  ;;  %v2604_v29 = vor.u32 %v3791_v26, %v2603_v24  ;;  %v3792_v32 = vld [vmem:[%s5977_s1 + $0x74] sm:$0xf0]  ;;  %v3788_v33 = vld [vmem:[%s5977_s1 + $0x5c] sm:$0xf] }
   0x9   :  { %153 = vmatpush.bf16.msra.mxu0 %v2556_v16  ;;  %v2608_v30 = vor.u32 %v3787_v27, %v2605_v28  ;;  %166 = vmatpush.bf16.msra.mxu1 %v2560_v17  ;;  %v2612_v34 = vor.u32 %v3792_v32, %v2611_v31  ;;  %v2613_v35 = vld [vmem:[%s5977_s1 + $0x78] sm:$0xf0]  ;;  %v2571_v36 = vld [vmem:[%s5977_s1 + $0x10] sm:$0xf]  ;;  %v3779_v40 = vld [vmem:[%s5977_s1 + $0x14] sm:$0xf] }
   0xa   :  { %179 = vmatpush.bf16.msra.mxu2 %v2564_v21  ;;  %v3783_v37 = vld [vmem:[%s5977_s1 + $0x2c] sm:$0xf0]  ;;  %v2616_v38 = vor.u32 %v3788_v33, %v2613_v35  ;;  %v2573_v41 = vld [vmem:[%s5977_s1 + $0x30] sm:$0xf0]  ;;  %v2579_v42 = vld [vmem:[%s5977_s1 + $0x18] sm:$0xf] }
   0xb   :  { %192 = vmatpush.bf16.msra.mxu3 %v2568_v25  ;;  %v2572_v39 = vor.u32 %v3783_v37, %v2571_v36  ;;  %v2576_v43 = vor.u32 %v3779_v40, %v2573_v41  ;;  %v3784_v44 = vld [vmem:[%s5977_s1 + $0x34] sm:$0xf0]  ;;  %v3780_v45 = vld [vmem:[%s5977_s1 + $0x1c] sm:$0xf]  ;;  %v2739_v47 = vld [vmem:[%s5979_s3 + $0xe0] sm:$0xf] }
   0xc   :  { %2617 = vmatmul.msk.bf16.vlgmr.msra.gmra.mxu0 %vm142_vm0, %v4173_v23  ;;  %v2581_v46 = vld [vmem:[%s5977_s1 + $0x38] sm:$0xf0]  ;;  %2618 = vmatmul.msk.bf16.vlgmr.msra.gmra.mxu1 %vm142_vm0, %v4173_v23  ;;  %v3823_v48 = vld [vmem:[%s5979_s3 + $0xec] sm:$0xf0]  ;;  %v2867_v49 = vld [vmem:[%s5979_s3 + $0x1e0] sm:$0xf]  ;;  %v2580_v50 = vor.u32 %v3784_v44, %v2579_v42 }
   0xd   :  { %204 = vmatpush.bf16.msrb.mxu0 %v2604_v29  ;;  %217 = vmatpush.bf16.msrb.mxu1 %v2608_v30  ;;  %v2740_v51 = vor.u32 %v3823_v48, %v2739_v47  ;;  %v3855_v52 = vld [vmem:[%s5979_s3 + $0x1ec] sm:$0xf0]  ;;  %v2723_v53 = vld [vmem:[%s5979_s3 + $0xc0] sm:$0xf]  ;;  %v2584_v55 = vor.u32 %v3780_v45, %v2581_v46 }
   0xe   :  { %2619 = vmatmul.msk.bf16.vlgmr.msra.gmra.mxu2 %vm142_vm0, %v4173_v23  ;;  %2620 = vmatmul.msk.bf16.vlgmr.msra.gmra.mxu3 %vm142_vm0, %v4173_v23  ;;  %v3819_v54 = vld [vmem:[%s5979_s3 + $0xcc] sm:$0xf0]  ;;  %v2868_v56 = vor.u32 %v3855_v52, %v2867_v49  ;;  %v2851_v57 = vld [vmem:[%s5979_s3 + $0x1c0] sm:$0xf] }
   0xf   :  { %230 = vmatpush.bf16.msrb.mxu2 %v2612_v34  ;;  %243 = vmatpush.bf16.msrb.mxu3 %v2616_v38  ;;  %v3851_v58 = vld [vmem:[%s5979_s3 + $0x1cc] sm:$0xf0]  ;;  %v2995_v59 = vld [vmem:[%s5979_s3 + $0x2e0] sm:$0xf]  ;;  %v2724_v60 = vor.u32 %v3819_v54, %v2723_v53 }
  0x10   :  { %v3887_v61 = vld [vmem:[%s5979_s3 + $0x2ec] sm:$0xf0]  ;;  %v3123_v62 = vld [vmem:[%s5979_s3 + $0x3e0] sm:$0xf]  ;;  %v2852_v0 = vor.u32 %v3851_v58, %v2851_v57 }
  0x11   :  { %205 = vmatpush.bf16.msrb.mxu0 %v2572_v39  ;;  %218 = vmatpush.bf16.msrb.mxu1 %v2576_v43  ;;  %v3919_v63 = vld [vmem:[%s5979_s3 + $0x3ec] sm:$0xf0]  ;;  %v2996_v1 = vor.u32 %v3887_v61, %v2995_v59  ;;  %v2707_v3 = vld [vmem:[%s5979_s3 + $0xa0] sm:$0xf] }
  0x12   :  { %v3124_v2 = vor.u32 %v3919_v63, %v3123_v62  ;;  %v3815_v4 = vld [vmem:[%s5979_s3 + $0xac] sm:$0xf0]  ;;  %v2835_v5 = vld [vmem:[%s5979_s3 + $0x1a0] sm:$0xf] }
  0x13   :  { %231 = vmatpush.bf16.msrb.mxu2 %v2580_v50  ;;  %v3847_v6 = vld [vmem:[%s5979_s3 + $0x1ac] sm:$0xf0]  ;;  %v2979_v7 = vld [vmem:[%s5979_s3 + $0x2c0] sm:$0xf]  ;;  %244 = vmatpush.bf16.msrb.mxu3 %v2584_v55  ;;  %v2708_v12 = vor.u32 %v3815_v4, %v2707_v3 }
  0x14   :  { %v3883_v8 = vld [vmem:[%s5979_s3 + $0x2cc] sm:$0xf0]  ;;  %v3107_v10 = vld [vmem:[%s5979_s3 + $0x3c0] sm:$0xf]  ;;  %v2836_v14 = vor.u32 %v3847_v6, %v2835_v5 }
  0x15   :  { %1812 = vmatpush.bf16.msra.mxu0 %v2740_v51  ;;  %1825 = vmatpush.bf16.msra.mxu1 %v2868_v56  ;;  %v2980_v9 = vor.u32 %v3883_v8, %v2979_v7  ;;  %v3915_v11 = vld [vmem:[%s5979_s3 + $0x3cc] sm:$0xf0]  ;;  %v2963_v15 = vld [vmem:[%s5979_s3 + $0x2a0] sm:$0xf] }
  0x16   :  { %v3108_v13 = vor.u32 %v3915_v11, %v3107_v10  ;;  %v3879_v16 = vld [vmem:[%s5979_s3 + $0x2ac] sm:$0xf0]  ;;  %v3091_v17 = vld [vmem:[%s5979_s3 + $0x3a0] sm:$0xf] }
  0x17   :  { %1838 = vmatpush.bf16.msra.mxu2 %v2996_v1  ;;  %1851 = vmatpush.bf16.msra.mxu3 %v3124_v2  ;;  %v3911_v18 = vld [vmem:[%s5979_s3 + $0x3ac] sm:$0xf0]  ;;  %v2691_v19 = vld [vmem:[%s5979_s3 + $0x80] sm:$0xf]  ;;  %v2964_v22 = vor.u32 %v3879_v16, %v2963_v15 }
  0x18   :  { %v3811_v20 = vld [vmem:[%s5979_s3 + $0x8c] sm:$0xf0]  ;;  %v2819_v21 = vld [vmem:[%s5979_s3 + $0x180] sm:$0xf]  ;;  %v3092_v25 = vor.u32 %v3911_v18, %v3091_v17 }
  0x19   :  { %1813 = vmatpush.bf16.msra.mxu0 %v2724_v60  ;;  %1826 = vmatpush.bf16.msra.mxu1 %v2852_v0  ;;  %v3843_v24 = vld [vmem:[%s5979_s3 + $0x18c] sm:$0xf0]  ;;  %v2947_v26 = vld [vmem:[%s5979_s3 + $0x280] sm:$0xf]  ;;  %v2692_v30 = vor.u32 %v3811_v20, %v2691_v19 }
  0x1a   :  { %v3875_v27 = vld [vmem:[%s5979_s3 + $0x28c] sm:$0xf0]  ;;  %v3075_v28 = vld [vmem:[%s5979_s3 + $0x380] sm:$0xf]  ;;  %v2820_v31 = vor.u32 %v3843_v24, %v2819_v21 }
  0x1b   :  { %1839 = vmatpush.bf16.msra.mxu2 %v2980_v9  ;;  %1852 = vmatpush.bf16.msra.mxu3 %v3108_v13  ;;  %v3907_v29 = vld [vmem:[%s5979_s3 + $0x38c] sm:$0xf0]  ;;  %v2675_v32 = vld [vmem:[%s5979_s3 + $0x60] sm:$0xf]  ;;  %v2948_v35 = vor.u32 %v3875_v27, %v2947_v26 }
  0x1c   :  { %v3807_v33 = vld [vmem:[%s5979_s3 + $0x6c] sm:$0xf0]  ;;  %v2803_v34 = vld [vmem:[%s5979_s3 + $0x160] sm:$0xf]  ;;  %2621 = vmatmul.msk.bf16.vlgmr.msrb.gmra.mxu0 %vm142_vm0, %v4173_v23  ;;  %v3076_v37 = vor.u32 %v3907_v29, %v3075_v28  ;;  %2622 = vmatmul.msk.bf16.vlgmr.msrb.gmra.mxu1 %vm142_vm0, %v4173_v23 }
  0x1d   :  { %1814 = vmatpush.bf16.msra.mxu0 %v2708_v12  ;;  %1827 = vmatpush.bf16.msra.mxu1 %v2836_v14  ;;  %v3839_v36 = vld [vmem:[%s5979_s3 + $0x16c] sm:$0xf0]  ;;  %v2931_v38 = vld [vmem:[%s5979_s3 + $0x260] sm:$0xf]  ;;  %v2676_v42 = vor.u32 %v3807_v33, %v2675_v32 }
  0x1e   :  { %v3871_v39 = vld [vmem:[%s5979_s3 + $0x26c] sm:$0xf0]  ;;  %2623 = vmatmul.msk.bf16.vlgmr.msrb.gmra.mxu2 %vm142_vm0, %v4173_v23  ;;  %v3059_v40 = vld [vmem:[%s5979_s3 + $0x360] sm:$0xf]  ;;  %2624 = vmatmul.msk.bf16.vlgmr.msrb.gmra.mxu3 %vm142_vm0, %v4173_v23  ;;  %v2804_v43 = vor.u32 %v3839_v36, %v2803_v34 }
  0x1f   :  { %1840 = vmatpush.bf16.msra.mxu2 %v2964_v22  ;;  %1853 = vmatpush.bf16.msra.mxu3 %v3092_v25  ;;  %v3903_v41 = vld [vmem:[%s5979_s3 + $0x36c] sm:$0xf0]  ;;  %v2659_v44 = vld [vmem:[%s5979_s3 + $0x40] sm:$0xf]  ;;  %v2932_v47 = vor.u32 %v3871_v39, %v2931_v38 }
  0x20   :  { %v3803_v45 = vld [vmem:[%s5979_s3 + $0x4c] sm:$0xf0]  ;;  %v2787_v46 = vld [vmem:[%s5979_s3 + $0x140] sm:$0xf]  ;;  %v3060_v48 = vor.u32 %v3903_v41, %v3059_v40 }
  0x21   :  { %1815 = vmatpush.bf16.msra.mxu0 %v2692_v30  ;;  %1828 = vmatpush.bf16.msra.mxu1 %v2820_v31  ;;  %v3835_v23 = vld [vmem:[%s5979_s3 + $0x14c] sm:$0xf0]  ;;  %v2915_v49 = vld [vmem:[%s5979_s3 + $0x240] sm:$0xf]  ;;  %v2660_v53 = vor.u32 %v3803_v45, %v2659_v44 }
  0x22   :  { %v3867_v50 = vld [vmem:[%s5979_s3 + $0x24c] sm:$0xf0]  ;;  %v3043_v51 = vld [vmem:[%s5979_s3 + $0x340] sm:$0xf]  ;;  %v2788_v54 = vor.u32 %v3835_v23, %v2787_v46 }
  0x23   :  { %1841 = vmatpush.bf16.msra.mxu2 %v2948_v35  ;;  %1854 = vmatpush.bf16.msra.mxu3 %v3076_v37  ;;  %v3899_v52 = vld [vmem:[%s5979_s3 + $0x34c] sm:$0xf0]  ;;  %v2643_v55 = vld [vmem:[%s5979_s3 + $0x20] sm:$0xf]  ;;  %v2916_v58 = vor.u32 %v3867_v50, %v2915_v49 }
  0x24   :  { %v3799_v56 = vld [vmem:[%s5979_s3 + $0x2c] sm:$0xf0]  ;;  %v2771_v57 = vld [vmem:[%s5979_s3 + $0x120] sm:$0xf]  ;;  %v3044_v60 = vor.u32 %v3899_v52, %v3043_v51 }
  0x25   :  { %1816 = vmatpush.bf16.msra.mxu0 %v2676_v42  ;;  %1829 = vmatpush.bf16.msra.mxu1 %v2804_v43  ;;  %v3831_v59 = vld [vmem:[%s5979_s3 + $0x12c] sm:$0xf0]  ;;  %v2899_v61 = vld [vmem:[%s5979_s3 + $0x220] sm:$0xf]  ;;  %v2644_v1 = vor.u32 %v3799_v56, %v2643_v55 }
  0x26   :  { %v3863_v62 = vld [vmem:[%s5979_s3 + $0x22c] sm:$0xf0]  ;;  %v3027_v63 = vld [vmem:[%s5979_s3 + $0x320] sm:$0xf]  ;;  %v2772_v4 = vor.u32 %v3831_v59, %v2771_v57 }
  0x27   :  { %1842 = vmatpush.bf16.msra.mxu2 %v2932_v47  ;;  %1855 = vmatpush.bf16.msra.mxu3 %v3060_v48  ;;  %v3895_v0 = vld [vmem:[%s5979_s3 + $0x32c] sm:$0xf0]  ;;  %v2627_v2 = vld [vmem:[%s5979_s3] sm:$0xf]  ;;  %v2900_v8 = vor.u32 %v3863_v62, %v2899_v61 }
  0x28   :  { %v3795_v3 = vld [vmem:[%s5979_s3 + $0xc] sm:$0xf0]  ;;  %v2755_v5 = vld [vmem:[%s5979_s3 + $0x100] sm:$0xf]  ;;  %v3028_v12 = vor.u32 %v3895_v0, %v3027_v63 }
  0x29   :  { %1817 = vmatpush.bf16.msra.mxu0 %v2660_v53  ;;  %1830 = vmatpush.bf16.msra.mxu1 %v2788_v54  ;;  %v3827_v6 = vld [vmem:[%s5979_s3 + $0x10c] sm:$0xf0]  ;;  %v3251_v7 = vld [vmem:[%s5979_s3 + $0x4e0] sm:$0xf]  ;;  %v2628_v16 = vor.u32 %v3795_v3, %v2627_v2 }
  0x2a   :  { %v3951_v9 = vld [vmem:[%s5979_s3 + $0x4ec] sm:$0xf0]  ;;  %v3379_v10 = vld [vmem:[%s5979_s3 + $0x5e0] sm:$0xf]  ;;  %v2756_v20 = vor.u32 %v3827_v6, %v2755_v5 }
  0x2b   :  { %1843 = vmatpush.bf16.msra.mxu2 %v2916_v58  ;;  %1856 = vmatpush.bf16.msra.mxu3 %v3044_v60  ;;  %v3983_v11 = vld [vmem:[%s5979_s3 + $0x5ec] sm:$0xf0]  ;;  %v2883_v13 = vld [vmem:[%s5979_s3 + $0x200] sm:$0xf]  ;;  %v3252_v21 = vor.u32 %v3951_v9, %v3251_v7 }
  0x2c   :  { %v3859_v14 = vld [vmem:[%s5979_s3 + $0x20c] sm:$0xf0]  ;;  %v3011_v15 = vld [vmem:[%s5979_s3 + $0x300] sm:$0xf]  ;;  %v3380_v25 = vor.u32 %v3983_v11, %v3379_v10 }
  0x2d   :  { %1818 = vmatpush.bf16.msra.mxu0 %v2644_v1  ;;  %v3891_v17 = vld [vmem:[%s5979_s3 + $0x30c] sm:$0xf0]  ;;  %v3507_v18 = vld [vmem:[%s5979_s3 + $0x6e0] sm:$0xf]  ;;  %1831 = vmatpush.bf16.msra.mxu1 %v2772_v4  ;;  %v2884_v28 = vor.u32 %v3859_v14, %v2883_v13 }
  0x2e   :  { %v4015_v19 = vld [vmem:[%s5979_s3 + $0x6ec] sm:$0xf0]  ;;  %v3635_v22 = vld [vmem:[%s5979_s3 + $0x7e0] sm:$0xf]  ;;  %v3012_v31 = vor.u32 %v3891_v17, %v3011_v15 }
  0x2f   :  { %1844 = vmatpush.bf16.msra.mxu2 %v2900_v8  ;;  %v4047_v24 = vld [vmem:[%s5979_s3 + $0x7ec] sm:$0xf0]  ;;  %1857 = vmatpush.bf16.msra.mxu3 %v3028_v12  ;;  %v3235_v26 = vld [vmem:[%s5979_s3 + $0x4c0] sm:$0xf]  ;;  %v3508_v32 = vor.u32 %v4015_v19, %v3507_v18 }
  0x30   :  { %v3947_v27 = vld [vmem:[%s5979_s3 + $0x4cc] sm:$0xf0]  ;;  %v3363_v29 = vld [vmem:[%s5979_s3 + $0x5c0] sm:$0xf]  ;;  %v3636_v33 = vor.u32 %v4047_v24, %v3635_v22 }
  0x31   :  { %v3979_v30 = vld [vmem:[%s5979_s3 + $0x5cc] sm:$0xf0]  ;;  %1819 = vmatpush.bf16.msra.mxu0 %v2628_v16  ;;  %v3491_v34 = vld [vmem:[%s5979_s3 + $0x6c0] sm:$0xf]  ;;  %1832 = vmatpush.bf16.msra.mxu1 %v2756_v20  ;;  %v3236_v36 = vor.u32 %v3947_v27, %v3235_v26 }
  0x32   :  { %v4011_v35 = vld [vmem:[%s5979_s3 + $0x6cc] sm:$0xf0]  ;;  %v3619_v37 = vld [vmem:[%s5979_s3 + $0x7c0] sm:$0xf]  ;;  %v3364_v39 = vor.u32 %v3979_v30, %v3363_v29 }
  0x33   :  { %v4043_v38 = vld [vmem:[%s5979_s3 + $0x7cc] sm:$0xf0]  ;;  %1845 = vmatpush.bf16.msra.mxu2 %v2884_v28  ;;  %v3219_v40 = vld [vmem:[%s5979_s3 + $0x4a0] sm:$0xf]  ;;  %1858 = vmatpush.bf16.msra.mxu3 %v3012_v31  ;;  %v3492_v44 = vor.u32 %v4011_v35, %v3491_v34 }
  0x34   :  { %v3943_v41 = vld [vmem:[%s5979_s3 + $0x4ac] sm:$0xf0]  ;;  %v3347_v42 = vld [vmem:[%s5979_s3 + $0x5a0] sm:$0xf]  ;;  %v3620_v45 = vor.u32 %v4043_v38, %v3619_v37 }
  0x35   :  { %1864 = vmatpush.bf16.msrb.mxu0 %v3252_v21  ;;  %1877 = vmatpush.bf16.msrb.mxu1 %v3380_v25  ;;  %v3975_v43 = vld [vmem:[%s5979_s3 + $0x5ac] sm:$0xf0]  ;;  %v3475_v46 = vld [vmem:[%s5979_s3 + $0x6a0] sm:$0xf]  ;;  %v3220_v23 = vor.u32 %v3943_v41, %v3219_v40 }
  0x36   :  { %v4007_v47 = vld [vmem:[%s5979_s3 + $0x6ac] sm:$0xf0]  ;;  %v3603_v48 = vld [vmem:[%s5979_s3 + $0x7a0] sm:$0xf]  ;;  %v3348_v50 = vor.u32 %v3975_v43, %v3347_v42 }
  0x37   :  { %1890 = vmatpush.bf16.msrb.mxu2 %v3508_v32  ;;  %1903 = vmatpush.bf16.msrb.mxu3 %v3636_v33  ;;  %v4039_v49 = vld [vmem:[%s5979_s3 + $0x7ac] sm:$0xf0]  ;;  %v3203_v51 = vld [vmem:[%s5979_s3 + $0x480] sm:$0xf]  ;;  %v3476_v55 = vor.u32 %v4007_v47, %v3475_v46 }
  0x38   :  { %v3939_v52 = vld [vmem:[%s5979_s3 + $0x48c] sm:$0xf0]  ;;  %v3331_v53 = vld [vmem:[%s5979_s3 + $0x580] sm:$0xf]  ;;  %v3604_v56 = vor.u32 %v4039_v49, %v3603_v48 }
  0x39   :  { %1865 = vmatpush.bf16.msrb.mxu0 %v3236_v36  ;;  %1878 = vmatpush.bf16.msrb.mxu1 %v3364_v39  ;;  %v3971_v54 = vld [vmem:[%s5979_s3 + $0x58c] sm:$0xf0]  ;;  %v3459_v57 = vld [vmem:[%s5979_s3 + $0x680] sm:$0xf]  ;;  %v3204_v59 = vor.u32 %v3939_v52, %v3203_v51 }
  0x3a   :  { %v4003_v58 = vld [vmem:[%s5979_s3 + $0x68c] sm:$0xf0]  ;;  %v3587_v60 = vld [vmem:[%s5979_s3 + $0x780] sm:$0xf]  ;;  %v3332_v62 = vor.u32 %v3971_v54, %v3331_v53 }
  0x3b   :  { %1891 = vmatpush.bf16.msrb.mxu2 %v3492_v44  ;;  %1904 = vmatpush.bf16.msrb.mxu3 %v3620_v45  ;;  %v4035_v61 = vld [vmem:[%s5979_s3 + $0x78c] sm:$0xf0]  ;;  %v3187_v63 = vld [vmem:[%s5979_s3 + $0x460] sm:$0xf]  ;;  %v3460_v3 = vor.u32 %v4003_v58, %v3459_v57  ;;  %v3853_v58 = vld [vmem:[%s5979_s3 + $0x1e4] sm:$0xf] }
  0x3c   :  { %v3935_v0 = vld [vmem:[%s5979_s3 + $0x46c] sm:$0xf0]  ;;  %v3315_v1 = vld [vmem:[%s5979_s3 + $0x560] sm:$0xf]  ;;  %v3588_v4 = vor.u32 %v4035_v61, %v3587_v60 }
  0x3d   :  { %1866 = vmatpush.bf16.msrb.mxu0 %v3220_v23  ;;  %1879 = vmatpush.bf16.msrb.mxu1 %v3348_v50  ;;  %v3967_v2 = vld [vmem:[%s5979_s3 + $0x56c] sm:$0xf0]  ;;  %v3188_v5 = vor.u32 %v3935_v0, %v3187_v63  ;;  %v3171_v7 = vld [vmem:[%s5979_s3 + $0x440] sm:$0xf] }
  0x3e   :  { %v3316_v6 = vor.u32 %v3967_v2, %v3315_v1  ;;  %v3931_v8 = vld [vmem:[%s5979_s3 + $0x44c] sm:$0xf0]  ;;  %v3299_v9 = vld [vmem:[%s5979_s3 + $0x540] sm:$0xf] }
  0x3f   :  { %1892 = vmatpush.bf16.msrb.mxu2 %v3476_v55  ;;  %1905 = vmatpush.bf16.msrb.mxu3 %v3604_v56  ;;  %v3963_v10 = vld [vmem:[%s5979_s3 + $0x54c] sm:$0xf0]  ;;  %v3172_v11 = vor.u32 %v3931_v8, %v3171_v7  ;;  %v3443_v13 = vld [vmem:[%s5979_s3 + $0x660] sm:$0xf]  ;;  %v3821_v55 = vld [vmem:[%s5979_s3 + $0xe4] sm:$0xf] }
  0x40   :  { %v3300_v12 = vor.u32 %v3963_v10, %v3299_v9  ;;  %v3999_v14 = vld [vmem:[%s5979_s3 + $0x66c] sm:$0xf0]  ;;  %v3571_v15 = vld [vmem:[%s5979_s3 + $0x760] sm:$0xf]  ;;  %v2741_v56 = vld [vmem:[%s5979_s3 + $0xf0] sm:$0xf0] }
  0x41   :  { %1867 = vmatpush.bf16.msrb.mxu0 %v3204_v59  ;;  %1880 = vmatpush.bf16.msrb.mxu1 %v3332_v62  ;;  %v3444_v16 = vor.u32 %v3999_v14, %v3443_v13  ;;  %v4031_v17 = vld [vmem:[%s5979_s3 + $0x76c] sm:$0xf0]  ;;  %v3155_v19 = vld [vmem:[%s5979_s3 + $0x420] sm:$0xf]  ;;  %v2869_v59 = vld [vmem:[%s5979_s3 + $0x1f0] sm:$0xf0]  ;;  %v2744_v63 = vor.u32 %v3821_v55, %v2741_v56 }
  0x42   :  { %v3572_v18 = vor.u32 %v4031_v17, %v3571_v15  ;;  %v3927_v20 = vld [vmem:[%s5979_s3 + $0x42c] sm:$0xf0]  ;;  %v3283_v22 = vld [vmem:[%s5979_s3 + $0x520] sm:$0xf]  ;;  %v2872_v2 = vor.u32 %v3853_v58, %v2869_v59  ;;  %v2853_v7 = vld [vmem:[%s5979_s3 + $0x1d0] sm:$0xf0] }
  0x43   :  { %1893 = vmatpush.bf16.msrb.mxu2 %v3460_v3  ;;  %1906 = vmatpush.bf16.msrb.mxu3 %v3588_v4  ;;  %v3156_v21 = vor.u32 %v3927_v20, %v3155_v19  ;;  %v3959_v24 = vld [vmem:[%s5979_s3 + $0x52c] sm:$0xf0]  ;;  %v3427_v26 = vld [vmem:[%s5979_s3 + $0x640] sm:$0xf]  ;;  %v3817_v3 = vld [vmem:[%s5979_s3 + $0xc4] sm:$0xf] }
  0x44   :  { %v3284_v25 = vor.u32 %v3959_v24, %v3283_v22  ;;  %v3995_v27 = vld [vmem:[%s5979_s3 + $0x64c] sm:$0xf0]  ;;  %v3555_v28 = vld [vmem:[%s5979_s3 + $0x740] sm:$0xf]  ;;  %v2725_v4 = vld [vmem:[%s5979_s3 + $0xd0] sm:$0xf0] }
  0x45   :  { %1868 = vmatpush.bf16.msrb.mxu0 %v3188_v5  ;;  %1881 = vmatpush.bf16.msrb.mxu1 %v3316_v6  ;;  %v3428_v29 = vor.u32 %v3995_v27, %v3427_v26  ;;  %v4027_v30 = vld [vmem:[%s5979_s3 + $0x74c] sm:$0xf0]  ;;  %v3139_v32 = vld [vmem:[%s5979_s3 + $0x400] sm:$0xf]  ;;  %v3849_v6 = vld [vmem:[%s5979_s3 + $0x1c4] sm:$0xf] }
  0x46   :  { %v3556_v31 = vor.u32 %v4027_v30, %v3555_v28  ;;  %v3923_v33 = vld [vmem:[%s5979_s3 + $0x40c] sm:$0xf0]  ;;  %v3267_v34 = vld [vmem:[%s5979_s3 + $0x500] sm:$0xf]  ;;  %v3885_v13 = vld [vmem:[%s5979_s3 + $0x2e4] sm:$0xf] }
  0x47   :  { %1894 = vmatpush.bf16.msrb.mxu2 %v3444_v16  ;;  %1907 = vmatpush.bf16.msrb.mxu3 %v3572_v18  ;;  %v3140_v35 = vor.u32 %v3923_v33, %v3139_v32  ;;  %v3955_v36 = vld [vmem:[%s5979_s3 + $0x50c] sm:$0xf0]  ;;  %v3411_v38 = vld [vmem:[%s5979_s3 + $0x620] sm:$0xf]  ;;  %v2997_v14 = vld [vmem:[%s5979_s3 + $0x2f0] sm:$0xf0]  ;;  %v2856_v18 = vor.u32 %v3849_v6, %v2853_v7 }
  0x48   :  { %v3268_v37 = vor.u32 %v3955_v36, %v3267_v34  ;;  %v3991_v39 = vld [vmem:[%s5979_s3 + $0x62c] sm:$0xf0]  ;;  %v3539_v41 = vld [vmem:[%s5979_s3 + $0x720] sm:$0xf]  ;;  %v3917_v15 = vld [vmem:[%s5979_s3 + $0x3e4] sm:$0xf]  ;;  %v3000_v27 = vor.u32 %v3885_v13, %v2997_v14 }
  0x49   :  { %1869 = vmatpush.bf16.msrb.mxu0 %v3172_v11  ;;  %1882 = vmatpush.bf16.msrb.mxu1 %v3300_v12  ;;  %v3412_v40 = vor.u32 %v3991_v39, %v3411_v38  ;;  %v4023_v42 = vld [vmem:[%s5979_s3 + $0x72c] sm:$0xf0]  ;;  %v3395_v44 = vld [vmem:[%s5979_s3 + $0x600] sm:$0xf]  ;;  %v2728_v12 = vor.u32 %v3817_v3, %v2725_v4  ;;  %v3125_v19 = vld [vmem:[%s5979_s3 + $0x3f0] sm:$0xf0] }
  0x4a   :  { %v3540_v43 = vor.u32 %v4023_v42, %v3539_v41  ;;  %v3987_v45 = vld [vmem:[%s5979_s3 + $0x60c] sm:$0xf0]  ;;  %v3523_v47 = vld [vmem:[%s5979_s3 + $0x700] sm:$0xf]  ;;  %v3813_v20 = vld [vmem:[%s5979_s3 + $0xa4] sm:$0xf]  ;;  %v3128_v30 = vor.u32 %v3917_v15, %v3125_v19 }
  0x4b   :  { %1895 = vmatpush.bf16.msrb.mxu2 %v3428_v29  ;;  %1908 = vmatpush.bf16.msrb.mxu3 %v3556_v31  ;;  %v3396_v46 = vor.u32 %v3987_v45, %v3395_v44  ;;  %v4019_v23 = vld [vmem:[%s5979_s3 + $0x70c] sm:$0xf0]  ;;  %v4626_v49 = vld [vmem:[%s5980_s2] sm:$0xff]  ;;  %v2981_v33 = vld [vmem:[%s5979_s3 + $0x2d0] sm:$0xf0] }
  0x4c   :  { %v3524_v48 = vor.u32 %v4019_v23, %v3523_v47  ;;  %v46_v50 = vperm.slane %v4626_v49, 0  ;;  %v47_v51 = vperm.slane %v4626_v49, 1  ;;  %v48_v62 = vperm.slane %v4626_v49, 2  ;;  %v3845_v24 = vld [vmem:[%s5979_s3 + $0x1a4] sm:$0xf] }
  0x4d   :  { %1870 = vmatpush.bf16.msrb.mxu0 %v3156_v21  ;;  %1883 = vmatpush.bf16.msrb.mxu1 %v3284_v25  ;;  %v49_v1 = vperm.slane %v4626_v49, 3  ;;  %v2709_v21 = vld [vmem:[%s5979_s3 + $0xb0] sm:$0xf0]  ;;  %v50_v28 = vperm.slane %v4626_v49, 4  ;;  %v3881_v32 = vld [vmem:[%s5979_s3 + $0x2c4] sm:$0xf] }
  0x4e   :  { %v2837_v25 = vld [vmem:[%s5979_s3 + $0x1b0] sm:$0xf0]  ;;  %v2712_v31 = vor.u32 %v3813_v20, %v2709_v21  ;;  %v3913_v34 = vld [vmem:[%s5979_s3 + $0x3c4] sm:$0xf]  ;;  %v2984_v44 = vor.u32 %v3881_v32, %v2981_v33  ;;  %v53_v3 = vperm.slane %v4626_v49, 7 }
  0x4f   :  { %1896 = vmatpush.bf16.msrb.mxu2 %v3412_v40  ;;  %1909 = vmatpush.bf16.msrb.mxu3 %v3540_v43  ;;  %v2840_v36 = vor.u32 %v3845_v24, %v2837_v25  ;;  %v3809_v38 = vld [vmem:[%s5979_s3 + $0x84] sm:$0xf]  ;;  %v2693_v39 = vld [vmem:[%s5979_s3 + $0x90] sm:$0xf0]  ;;  %v51_v40 = vperm.slane %v4626_v49, 5 }
  0x50   :  { %v3841_v41 = vld [vmem:[%s5979_s3 + $0x184] sm:$0xf]  ;;  %v2821_v42 = vld [vmem:[%s5979_s3 + $0x190] sm:$0xf0]  ;;  %v2696_v23 = vor.u32 %v3809_v38, %v2693_v39 }
  0x51   :  { %1871 = vmatpush.bf16.msrb.mxu0 %v3140_v35  ;;  %1884 = vmatpush.bf16.msrb.mxu1 %v3268_v37  ;;  %v3109_v37 = vld [vmem:[%s5979_s3 + $0x3d0] sm:$0xf0]  ;;  %v3805_v56 = vld [vmem:[%s5979_s3 + $0x64] sm:$0xf] }
  0x52   :  { %v3112_v47 = vor.u32 %v3913_v34, %v3109_v37  ;;  %v3093_v55 = vld [vmem:[%s5979_s3 + $0x3b0] sm:$0xf0]  ;;  %v3837_v59 = vld [vmem:[%s5979_s3 + $0x164] sm:$0xf] }
  0x53   :  { %1897 = vmatpush.bf16.msrb.mxu2 %v3396_v46  ;;  %1910 = vmatpush.bf16.msrb.mxu3 %v3524_v48  ;;  %v3877_v48 = vld [vmem:[%s5979_s3 + $0x2a4] sm:$0xf]  ;;  %v2677_v58 = vld [vmem:[%s5979_s3 + $0x70] sm:$0xf0] }
  0x54   :  { %v3873_v4 = vld [vmem:[%s5979_s3 + $0x284] sm:$0xf]  ;;  %v2949_v6 = vld [vmem:[%s5979_s3 + $0x290] sm:$0xf0] }
  0x55   :  { %v2661_v13 = vld [vmem:[%s5979_s3 + $0x50] sm:$0xf0]  ;;  %v3833_v14 = vld [vmem:[%s5979_s3 + $0x144] sm:$0xf] }
  0x56   :  { %v2789_v15 = vld [vmem:[%s5979_s3 + $0x150] sm:$0xf0]  ;;  %v3869_v21 = vld [vmem:[%s5979_s3 + $0x264] sm:$0xf] }
  0x57   :  { %v3901_v24 = vld [vmem:[%s5979_s3 + $0x364] sm:$0xf]  ;;  %v2645_v32 = vld [vmem:[%s5979_s3 + $0x30] sm:$0xf0] }
  0x58   :  { %v2773_v37 = vld [vmem:[%s5979_s3 + $0x130] sm:$0xf0] }
  0x89   :  { %v155_v52 = vpop.f32.mrf.mxu0  ;;  %v168_v54 = vpop.f32.mrf.mxu1 }
  0x8a   :  { %v156_v53 = vadd.f32 %v155_v52, %v46_v50  ;;  %v169_v57 = vadd.f32 %v168_v54, %v47_v51  ;;  %v2965_v50 = vld [vmem:[%s5979_s3 + $0x2b0] sm:$0xf0]  ;;  %v3909_v54 = vld [vmem:[%s5979_s3 + $0x3a4] sm:$0xf] }
  0x8c   :  { %v250_v60 = vmax.f32 %v156_v53, 0.0  ;;  %v251_v61 = vmax.f32 %v169_v57, 0.0  ;;  %v2824_v53 = vor.u32 %v3841_v41, %v2821_v42  ;;  %v3865_v42 = vld [vmem:[%s5979_s3 + $0x244] sm:$0xf] }
  0x8e   :  { %v4643_v0 = vpack.c.bf16 %v250_v60, %v250_v60  ;;  %v4652_v5 = vpack.c.bf16 %v251_v61, %v251_v61  ;;  %v2805_v60 = vld [vmem:[%s5979_s3 + $0x170] sm:$0xf0] }
  0x90   :  { %1820 = vmatmul.bf16.vlgmr.msra.gmra.mxu0 %v4643_v0  ;;  %1833 = vmatmul.bf16.vlgmr.msra.gmra.mxu1 %v4652_v5 }
  0x91   :  { %v181_v8 = vpop.f32.mrf.mxu2  ;;  %v194_v10 = vpop.f32.mrf.mxu3  ;;  %1916 = vmatpush.bf16.msra.mxu0 %v2744_v63  ;;  %1929 = vmatpush.bf16.msra.mxu1 %v2872_v2  ;;  %v52_v63 = vperm.slane %v4626_v49, 6  ;;  %v3096_v2 = vor.u32 %v3909_v54, %v3093_v55  ;;  %v3077_v49 = vld [vmem:[%s5979_s3 + $0x390] sm:$0xf0] }
  0x92   :  { %v182_v9 = vadd.f32 %v181_v8, %v48_v62  ;;  %v157_v11 = vpop.f32.mrf.mxu0  ;;  %v195_v16 = vadd.f32 %v194_v10, %v49_v1  ;;  %v170_v17 = vpop.f32.mrf.mxu1  ;;  %v2968_v62 = vor.u32 %v3877_v48, %v2965_v50  ;;  %v2680_v8 = vor.u32 %v3805_v56, %v2677_v58  ;;  %v3905_v10 = vld [vmem:[%s5979_s3 + $0x384] sm:$0xf]  ;;  %v2629_v50 = vld [vmem:[%s5979_s3 + $0x10] sm:$0xf0] }
  0x93   :  { %v3801_v11 = vld [vmem:[%s5979_s3 + $0x44] sm:$0xf]  ;;  %v2952_v17 = vor.u32 %v3873_v4, %v2949_v6  ;;  %v3080_v20 = vor.u32 %v3905_v10, %v3077_v49  ;;  %v3253_v56 = vld [vmem:[%s5979_s3 + $0x4f0] sm:$0xf0] }
  0x94   :  { %v252_v22 = vmax.f32 %v182_v9, 0.0  ;;  %v253_v26 = vmax.f32 %v195_v16, 0.0  ;;  %v2808_v9 = vor.u32 %v3837_v59, %v2805_v60  ;;  %v3793_v48 = vld [vmem:[%s5979_s3 + $0x4] sm:$0xf]  ;;  %v3381_v58 = vld [vmem:[%s5979_s3 + $0x5f0] sm:$0xf0] }
  0x95   :  { %1917 = vmatpush.bf16.msra.mxu0 %v2728_v12  ;;  %1930 = vmatpush.bf16.msra.mxu1 %v2856_v18  ;;  %v3237_v10 = vld [vmem:[%s5979_s3 + $0x4d0] sm:$0xf0]  ;;  %v3977_v49 = vld [vmem:[%s5979_s3 + $0x5c4] sm:$0xf] }
  0x96   :  { %v4687_v29 = vpack.c.bf16 %v252_v22, %v252_v22  ;;  %v4698_v35 = vpack.c.bf16 %v253_v26, %v253_v26  ;;  %v2933_v22 = vld [vmem:[%s5979_s3 + $0x270] sm:$0xf0] }
  0x97   :  { %v2936_v39 = vor.u32 %v3869_v21, %v2933_v22  ;;  %v4045_v22 = vld [vmem:[%s5979_s3 + $0x7e4] sm:$0xf] }
  0x98   :  { %1846 = vmatmul.bf16.vlgmr.msra.gmra.mxu2 %v4687_v29  ;;  %1859 = vmatmul.bf16.vlgmr.msra.gmra.mxu3 %v4698_v35 }
  0x99   :  { %1942 = vmatpush.bf16.msra.mxu2 %v3000_v27  ;;  %v183_v43 = vpop.f32.mrf.mxu2  ;;  %1955 = vmatpush.bf16.msra.mxu3 %v3128_v30  ;;  %v196_v45 = vpop.f32.mrf.mxu3  ;;  %v2664_v27 = vor.u32 %v3801_v11, %v2661_v13  ;;  %v3061_v30 = vld [vmem:[%s5979_s3 + $0x370] sm:$0xf0] }
  0x9a   :  { %1918 = vmatpush.bf16.msra.mxu0 %v2712_v31  ;;  %v207_v46 = vpop.f32.mrf.mxu0  ;;  %1931 = vmatpush.bf16.msra.mxu1 %v2840_v36  ;;  %v220_v52 = vpop.f32.mrf.mxu1  ;;  %v3797_v31 = vld [vmem:[%s5979_s3 + $0x24] sm:$0xf]  ;;  %v3064_v41 = vor.u32 %v3901_v24, %v3061_v30  ;;  %v2917_v43 = vld [vmem:[%s5979_s3 + $0x250] sm:$0xf0] }
  0x9b   :  { %v208_v51 = vadd.f32 %v207_v46, %v50_v28  ;;  %v221_v57 = vadd.f32 %v220_v52, %v51_v40  ;;  %v2792_v28 = vor.u32 %v3833_v14, %v2789_v15  ;;  %v3829_v36 = vld [vmem:[%s5979_s3 + $0x124] sm:$0xf]  ;;  %v2648_v46 = vor.u32 %v3797_v31, %v2645_v32  ;;  %v2757_v52 = vld [vmem:[%s5979_s3 + $0x110] sm:$0xf0] }
  0x9c   :  { %v2920_v54 = vor.u32 %v3865_v42, %v2917_v43  ;;  %v3365_v11 = vld [vmem:[%s5979_s3 + $0x5d0] sm:$0xf0]  ;;  %v3857_v14 = vld [vmem:[%s5979_s3 + $0x204] sm:$0xf] }
  0x9d   :  { %v254_v61 = vmax.f32 %v208_v51, 0.0  ;;  %1943 = vmatpush.bf16.msra.mxu2 %v2984_v44  ;;  %v255_v1 = vmax.f32 %v221_v57, 0.0  ;;  %1956 = vmatpush.bf16.msra.mxu3 %v3112_v47  ;;  %v3897_v44 = vld [vmem:[%s5979_s3 + $0x344] sm:$0xf]  ;;  %v2776_v47 = vor.u32 %v3829_v36, %v2773_v37  ;;  %v2885_v15 = vld [vmem:[%s5979_s3 + $0x210] sm:$0xf0]  ;;  %v3368_v21 = vor.u32 %v3977_v49, %v3365_v11 }
  0x9e   :  { %1919 = vmatpush.bf16.msra.mxu0 %v2696_v23  ;;  %1932 = vmatpush.bf16.msra.mxu1 %v2824_v53  ;;  %v3045_v23 = vld [vmem:[%s5979_s3 + $0x350] sm:$0xf0]  ;;  %v3825_v51 = vld [vmem:[%s5979_s3 + $0x104] sm:$0xf] }
  0x9f   :  { %v4750_v7 = vpack.c.bf16 %v254_v61, %v254_v61  ;;  %v4761_v12 = vpack.c.bf16 %v255_v1, %v255_v1  ;;  %v3949_v53 = vld [vmem:[%s5979_s3 + $0x4e4] sm:$0xf]  ;;  %v3048_v59 = vor.u32 %v3897_v44, %v3045_v23  ;;  %v2760_v1 = vor.u32 %v3825_v51, %v2757_v52  ;;  %v3637_v24 = vld [vmem:[%s5979_s3 + $0x7f0] sm:$0xf0] }
  0xa0   :  { %v3981_v57 = vld [vmem:[%s5979_s3 + $0x5e4] sm:$0xf]  ;;  %v3256_v4 = vor.u32 %v3949_v53, %v3253_v56  ;;  %v3349_v30 = vld [vmem:[%s5979_s3 + $0x5b0] sm:$0xf0] }
  0xa1   :  { %1944 = vmatpush.bf16.msra.mxu2 %v2968_v62  ;;  %v233_v16 = vpop.f32.mrf.mxu2  ;;  %1872 = vmatmul.bf16.vlgmr.msrb.gmra.mxu0 %v4750_v7  ;;  %v246_v19 = vpop.f32.mrf.mxu3  ;;  %v3861_v61 = vld [vmem:[%s5979_s3 + $0x224] sm:$0xf]  ;;  %v2901_v62 = vld [vmem:[%s5979_s3 + $0x230] sm:$0xf0]  ;;  %v3384_v6 = vor.u32 %v3981_v57, %v3381_v58 }
  0xa2   :  { %1957 = vmatpush.bf16.msra.mxu3 %v3096_v2  ;;  %v234_v18 = vadd.f32 %v233_v16, %v52_v63  ;;  %1885 = vmatmul.bf16.vlgmr.msrb.gmra.mxu1 %v4761_v12  ;;  %v209_v25 = vpop.f32.mrf.mxu0  ;;  %v247_v26 = vadd.f32 %v246_v19, %v53_v3  ;;  %v222_v33 = vpop.f32.mrf.mxu1  ;;  %v2632_v63 = vor.u32 %v3793_v48, %v2629_v50  ;;  %v3893_v2 = vld [vmem:[%s5979_s3 + $0x324] sm:$0xf]  ;;  %v3029_v3 = vld [vmem:[%s5979_s3 + $0x330] sm:$0xf0] }
  0xa3   :  { %1920 = vmatpush.bf16.msra.mxu0 %v2680_v8  ;;  %1933 = vmatpush.bf16.msra.mxu1 %v2808_v9  ;;  %v3945_v8 = vld [vmem:[%s5979_s3 + $0x4c4] sm:$0xf]  ;;  %v2904_v9 = vor.u32 %v3861_v61, %v2901_v62  ;;  %v3032_v13 = vor.u32 %v3893_v2, %v3029_v3  ;;  %v3509_v19 = vld [vmem:[%s5979_s3 + $0x6f0] sm:$0xf0]  ;;  %v3640_v33 = vor.u32 %v4045_v22, %v3637_v24 }
  0xa4   :  { %v256_v34 = vmax.f32 %v234_v18, 0.0  ;;  %v257_v38 = vmax.f32 %v247_v26, 0.0  ;;  %v3889_v16 = vld [vmem:[%s5979_s3 + $0x304] sm:$0xf]  ;;  %v2888_v26 = vor.u32 %v3857_v14, %v2885_v15  ;;  %v3493_v36 = vld [vmem:[%s5979_s3 + $0x6d0] sm:$0xf0] }
  0xa5   :  { %1945 = vmatpush.bf16.msra.mxu2 %v2952_v17  ;;  %v3013_v17 = vld [vmem:[%s5979_s3 + $0x310] sm:$0xf0]  ;;  %v4013_v18 = vld [vmem:[%s5979_s3 + $0x6e4] sm:$0xf] }
  0xa6   :  { %v4798_v40 = vpack.c.bf16 %v256_v34, %v256_v34  ;;  %1958 = vmatpush.bf16.msra.mxu3 %v3080_v20  ;;  %v4809_v45 = vpack.c.bf16 %v257_v38, %v257_v38  ;;  %v3240_v20 = vor.u32 %v3945_v8, %v3237_v10  ;;  %v3941_v25 = vld [vmem:[%s5979_s3 + $0x4a4] sm:$0xf]  ;;  %v3016_v31 = vor.u32 %v3889_v16, %v3013_v17  ;;  %v3205_v43 = vld [vmem:[%s5979_s3 + $0x490] sm:$0xf0] }
  0xa7   :  { %1921 = vmatpush.bf16.msra.mxu0 %v2664_v27  ;;  %1934 = vmatpush.bf16.msra.mxu1 %v2792_v28  ;;  %v3221_v27 = vld [vmem:[%s5979_s3 + $0x4b0] sm:$0xf0]  ;;  %v3973_v28 = vld [vmem:[%s5979_s3 + $0x5a4] sm:$0xf]  ;;  %v3512_v32 = vor.u32 %v4013_v18, %v3509_v19 }
  0xa8   :  { %1898 = vmatmul.bf16.vlgmr.msrb.gmra.mxu2 %v4798_v40  ;;  %1911 = vmatmul.bf16.vlgmr.msrb.gmra.mxu3 %v4809_v45  ;;  %v4009_v34 = vld [vmem:[%s5979_s3 + $0x6c4] sm:$0xf]  ;;  %v3224_v37 = vor.u32 %v3941_v25, %v3221_v27  ;;  %v3352_v38 = vor.u32 %v3973_v28, %v3349_v30  ;;  %v3477_v50 = vld [vmem:[%s5979_s3 + $0x6b0] sm:$0xf0] }
  0xa9   :  { %1946 = vmatpush.bf16.msra.mxu2 %v2936_v39  ;;  %v235_v55 = vpop.f32.mrf.mxu2  ;;  %v248_v60 = vpop.f32.mrf.mxu3  ;;  %v4041_v39 = vld [vmem:[%s5979_s3 + $0x7c4] sm:$0xf]  ;;  %v3189_v56 = vld [vmem:[%s5979_s3 + $0x470] sm:$0xf0] }
  0xaa   :  { %1959 = vmatpush.bf16.msra.mxu3 %v3064_v41  ;;  %v3621_v41 = vld [vmem:[%s5979_s3 + $0x7d0] sm:$0xf0]  ;;  %v3937_v42 = vld [vmem:[%s5979_s3 + $0x484] sm:$0xf] }
  0xab   :  { %1922 = vmatpush.bf16.msra.mxu0 %v2648_v46  ;;  %1935 = vmatpush.bf16.msra.mxu1 %v2776_v47  ;;  %v3969_v44 = vld [vmem:[%s5979_s3 + $0x584] sm:$0xf]  ;;  %v3333_v46 = vld [vmem:[%s5979_s3 + $0x590] sm:$0xf0]  ;;  %v3496_v47 = vor.u32 %v4009_v34, %v3493_v36  ;;  %v3624_v23 = vor.u32 %v4041_v39, %v3621_v41  ;;  %v3208_v51 = vor.u32 %v3937_v42, %v3205_v43  ;;  %v3824_v39 = vld [vmem:[%s5979_s3 + $0xf4] sm:$0xf0] }
  0xac   :  { %v4005_v48 = vld [vmem:[%s5979_s3 + $0x6a4] sm:$0xf]  ;;  %v3336_v52 = vor.u32 %v3969_v44, %v3333_v46  ;;  %v3317_v58 = vld [vmem:[%s5979_s3 + $0x570] sm:$0xf0]  ;;  %v2875_v41 = vld [vmem:[%s5979_s3 + $0x1e8] sm:$0xf] }
  0xad   :  { %1947 = vmatpush.bf16.msra.mxu2 %v2920_v54  ;;  %v4037_v53 = vld [vmem:[%s5979_s3 + $0x7a4] sm:$0xf]  ;;  %v3605_v54 = vld [vmem:[%s5979_s3 + $0x7b0] sm:$0xf0]  ;;  %v3856_v42 = vld [vmem:[%s5979_s3 + $0x1f4] sm:$0xf0] }
  0xae   :  { %1960 = vmatpush.bf16.msra.mxu3 %v3048_v59  ;;  %v3933_v55 = vld [vmem:[%s5979_s3 + $0x464] sm:$0xf]  ;;  %v3480_v59 = vor.u32 %v4005_v48, %v3477_v50  ;;  %v3608_v60 = vor.u32 %v4037_v53, %v3605_v54  ;;  %v3461_v62 = vld [vmem:[%s5979_s3 + $0x690] sm:$0xf0]  ;;  %v2731_v53 = vld [vmem:[%s5979_s3 + $0xc8] sm:$0xf] }
  0xaf   :  { %1923 = vmatpush.bf16.msra.mxu0 %v2632_v63  ;;  %1936 = vmatpush.bf16.msra.mxu1 %v2760_v1  ;;  %v3965_v57 = vld [vmem:[%s5979_s3 + $0x564] sm:$0xf]  ;;  %v3192_v63 = vor.u32 %v3933_v55, %v3189_v56  ;;  %v3589_v3 = vld [vmem:[%s5979_s3 + $0x790] sm:$0xf0]  ;;  %v3820_v55 = vld [vmem:[%s5979_s3 + $0xd4] sm:$0xf0] }
  0xb0   :  { %v4001_v61 = vld [vmem:[%s5979_s3 + $0x684] sm:$0xf]  ;;  %v3320_v1 = vor.u32 %v3965_v57, %v3317_v58  ;;  %v3573_v17 = vld [vmem:[%s5979_s3 + $0x770] sm:$0xf0]  ;;  %v2859_v56 = vld [vmem:[%s5979_s3 + $0x1c8] sm:$0xf] }
  0xb1   :  { %1948 = vmatpush.bf16.msra.mxu2 %v2904_v9  ;;  %v4033_v2 = vld [vmem:[%s5979_s3 + $0x784] sm:$0xf]  ;;  %v3301_v9 = vld [vmem:[%s5979_s3 + $0x550] sm:$0xf0]  ;;  %v3464_v10 = vor.u32 %v4001_v61, %v3461_v62  ;;  %v3852_v57 = vld [vmem:[%s5979_s3 + $0x1d4] sm:$0xf0] }
  0xb2   :  { %1961 = vmatpush.bf16.msra.mxu3 %v3032_v13  ;;  %1924 = vmatmul.bf16.vlgmr.msra.gmra.mxu0 %v4643_v0  ;;  %v3961_v8 = vld [vmem:[%s5979_s3 + $0x544] sm:$0xf]  ;;  %v3592_v49 = vor.u32 %v4033_v2, %v3589_v3  ;;  %v3445_v13 = vld [vmem:[%s5979_s3 + $0x670] sm:$0xf0]  ;;  %v2732_v2 = vor.u32 %v3820_v55, %v2731_v53  ;;  %v2860_v3 = vor.u32 %v3852_v57, %v2859_v56  ;;  %v3836_v55 = vld [vmem:[%s5979_s3 + $0x154] sm:$0xf0] }
  0xb3   :  { %1968 = vmatpush.bf16.msrb.mxu0 %v3256_v4  ;;  %1981 = vmatpush.bf16.msrb.mxu1 %v3384_v6  ;;  %v3929_v4 = vld [vmem:[%s5979_s3 + $0x444] sm:$0xf]  ;;  %v3173_v6 = vld [vmem:[%s5979_s3 + $0x450] sm:$0xf0]  ;;  %v3304_v15 = vor.u32 %v3961_v8, %v3301_v9  ;;  %v2715_v9 = vld [vmem:[%s5979_s3 + $0xa8] sm:$0xf] }
  0xb4   :  { %1937 = vmatmul.bf16.vlgmr.msra.gmra.mxu1 %v4652_v5  ;;  %v3997_v11 = vld [vmem:[%s5979_s3 + $0x664] sm:$0xf]  ;;  %v3176_v14 = vor.u32 %v3929_v4, %v3173_v6  ;;  %v3157_v19 = vld [vmem:[%s5979_s3 + $0x430] sm:$0xf0]  ;;  %v3131_v4 = vld [vmem:[%s5979_s3 + $0x3e8] sm:$0xf] }
  0xb5   :  { %1949 = vmatpush.bf16.msra.mxu2 %v2888_v26  ;;  %v4029_v16 = vld [vmem:[%s5979_s3 + $0x764] sm:$0xf]  ;;  %v3448_v22 = vor.u32 %v3997_v11, %v3445_v13  ;;  %v3429_v26 = vld [vmem:[%s5979_s3 + $0x650] sm:$0xf0]  ;;  %v3920_v6 = vld [vmem:[%s5979_s3 + $0x3f4] sm:$0xf0] }
  0xb6   :  { %1962 = vmatpush.bf16.msra.mxu3 %v3016_v31  ;;  %v3925_v18 = vld [vmem:[%s5979_s3 + $0x424] sm:$0xf]  ;;  %v3576_v24 = vor.u32 %v4029_v16, %v3573_v17  ;;  %v3557_v31 = vld [vmem:[%s5979_s3 + $0x750] sm:$0xf0]  ;;  %v2843_v13 = vld [vmem:[%s5979_s3 + $0x1a8] sm:$0xf] }
  0xb7   :  { %1969 = vmatpush.bf16.msrb.mxu0 %v3240_v20  ;;  %1982 = vmatpush.bf16.msrb.mxu1 %v3368_v21  ;;  %v3957_v20 = vld [vmem:[%s5979_s3 + $0x524] sm:$0xf]  ;;  %v3285_v21 = vld [vmem:[%s5979_s3 + $0x530] sm:$0xf0]  ;;  %v3160_v28 = vor.u32 %v3925_v18, %v3157_v19  ;;  %v2987_v16 = vld [vmem:[%s5979_s3 + $0x2c8] sm:$0xf] }
  0xb8   :  { %1950 = vmatmul.bf16.vlgmr.msra.gmra.mxu2 %v4687_v29  ;;  %v3993_v25 = vld [vmem:[%s5979_s3 + $0x644] sm:$0xf]  ;;  %v3288_v30 = vor.u32 %v3957_v20, %v3285_v21  ;;  %v3269_v36 = vld [vmem:[%s5979_s3 + $0x510] sm:$0xf0]  ;;  %v3884_v17 = vld [vmem:[%s5979_s3 + $0x2d4] sm:$0xf0] }
  0xb9   :  { %1994 = vmatpush.bf16.msrb.mxu2 %v3512_v32  ;;  %1963 = vmatmul.bf16.vlgmr.msra.gmra.mxu3 %v4698_v35  ;;  %v4025_v27 = vld [vmem:[%s5979_s3 + $0x744] sm:$0xf]  ;;  %v3413_v46 = vld [vmem:[%s5979_s3 + $0x630] sm:$0xf0]  ;;  %v3115_v19 = vld [vmem:[%s5979_s3 + $0x3c8] sm:$0xf] }
  0xba   :  { %2007 = vmatpush.bf16.msrb.mxu3 %v3640_v33  ;;  %v3921_v32 = vld [vmem:[%s5979_s3 + $0x404] sm:$0xf]  ;;  %v3141_v33 = vld [vmem:[%s5979_s3 + $0x410] sm:$0xf0]  ;;  %v3560_v43 = vor.u32 %v4025_v27, %v3557_v31  ;;  %v3916_v20 = vld [vmem:[%s5979_s3 + $0x3d4] sm:$0xf0] }
  0xbb   :  { %1970 = vmatpush.bf16.msrb.mxu0 %v3224_v37  ;;  %1983 = vmatpush.bf16.msrb.mxu1 %v3352_v38  ;;  %v3953_v34 = vld [vmem:[%s5979_s3 + $0x504] sm:$0xf]  ;;  %v2747_v37 = vld [vmem:[%s5979_s3 + $0xe8] sm:$0xf]  ;;  %v3432_v38 = vor.u32 %v3993_v25, %v3429_v26  ;;  %v3541_v50 = vld [vmem:[%s5979_s3 + $0x730] sm:$0xf0]  ;;  %v2988_v25 = vor.u32 %v3884_v17, %v2987_v16 }
  0xbc   :  { %v3989_v44 = vld [vmem:[%s5979_s3 + $0x624] sm:$0xf]  ;;  %v3525_v62 = vld [vmem:[%s5979_s3 + $0x710] sm:$0xf0]  ;;  %v2827_v26 = vld [vmem:[%s5979_s3 + $0x188] sm:$0xf] }
  0xbd   :  { %1995 = vmatpush.bf16.msrb.mxu2 %v3496_v47  ;;  %v3144_v47 = vor.u32 %v3921_v32, %v3141_v33  ;;  %v4021_v48 = vld [vmem:[%s5979_s3 + $0x724] sm:$0xf]  ;;  %v3416_v54 = vor.u32 %v3989_v44, %v3413_v46  ;;  %v3844_v27 = vld [vmem:[%s5979_s3 + $0x194] sm:$0xf0]  ;;  %v3099_v33 = vld [vmem:[%s5979_s3 + $0x3a8] sm:$0xf] }
  0xbe   :  { %2008 = vmatpush.bf16.msrb.mxu3 %v3624_v23  ;;  %v3272_v23 = vor.u32 %v3953_v34, %v3269_v36  ;;  %v3544_v58 = vor.u32 %v4021_v48, %v3541_v50  ;;  %v4017_v61 = vld [vmem:[%s5979_s3 + $0x704] sm:$0xf]  ;;  %v3880_v31 = vld [vmem:[%s5979_s3 + $0x2b4] sm:$0xf0]  ;;  %v2828_v36 = vor.u32 %v3844_v27, %v2827_v26  ;;  %v2955_v44 = vld [vmem:[%s5979_s3 + $0x288] sm:$0xf] }
  0xbf   :  { %1971 = vmatpush.bf16.msrb.mxu0 %v3208_v51  ;;  %1984 = vmatpush.bf16.msrb.mxu1 %v3336_v52  ;;  %v2748_v51 = vor.u32 %v3824_v39, %v2747_v37  ;;  %v2876_v52 = vor.u32 %v3856_v42, %v2875_v41  ;;  %v3912_v34 = vld [vmem:[%s5979_s3 + $0x3b4] sm:$0xf0]  ;;  %v2683_v37 = vld [vmem:[%s5979_s3 + $0x68] sm:$0xf] }
  0xc0   :  { %v2811_v41 = vld [vmem:[%s5979_s3 + $0x168] sm:$0xf]  ;;  %v3840_v42 = vld [vmem:[%s5979_s3 + $0x174] sm:$0xf0] }
  0xc1   :  { %1996 = vmatpush.bf16.msrb.mxu2 %v3480_v59  ;;  %v3985_v59 = vld [vmem:[%s5979_s3 + $0x604] sm:$0xf]  ;;  %v3876_v46 = vld [vmem:[%s5979_s3 + $0x294] sm:$0xf0]  ;;  %v2812_v50 = vor.u32 %v3840_v42, %v2811_v41  ;;  %v2939_v57 = vld [vmem:[%s5979_s3 + $0x268] sm:$0xf] }
  0xc2   :  { %2009 = vmatpush.bf16.msrb.mxu3 %v3608_v60  ;;  %v3397_v60 = vld [vmem:[%s5979_s3 + $0x610] sm:$0xf0]  ;;  %v3908_v48 = vld [vmem:[%s5979_s3 + $0x394] sm:$0xf0]  ;;  %v2956_v53 = vor.u32 %v3876_v46, %v2955_v44  ;;  %v2763_v16 = vld [vmem:[%s5979_s3 + $0x108] sm:$0xf] }
  0xc3   :  { %1972 = vmatpush.bf16.msrb.mxu0 %v3192_v63  ;;  %1985 = vmatpush.bf16.msrb.mxu1 %v3320_v1  ;;  %v3003_v63 = vld [vmem:[%s5979_s3 + $0x2e8] sm:$0xf]  ;;  %v3888_v1 = vld [vmem:[%s5979_s3 + $0x2f4] sm:$0xf0]  ;;  %v3400_v8 = vor.u32 %v3985_v59, %v3397_v60 }
  0xc4   :  { %v3004_v11 = vor.u32 %v3888_v1, %v3003_v63  ;;  %v3067_v60 = vld [vmem:[%s5979_s3 + $0x368] sm:$0xf]  ;;  %v3800_v1 = vld [vmem:[%s5979_s3 + $0x34] sm:$0xf0] }
  0xc5   :  { %1997 = vmatpush.bf16.msrb.mxu2 %v3464_v10  ;;  %v3816_v10 = vld [vmem:[%s5979_s3 + $0xb4] sm:$0xf0]  ;;  %v2651_v63 = vld [vmem:[%s5979_s3 + $0x28] sm:$0xf] }
  0xc6   :  { %2010 = vmatpush.bf16.msrb.mxu3 %v3592_v49  ;;  %v3528_v49 = vor.u32 %v4017_v61, %v3525_v62  ;;  %v2716_v18 = vor.u32 %v3816_v10, %v2715_v9  ;;  %v3904_v61 = vld [vmem:[%s5979_s3 + $0x374] sm:$0xf0]  ;;  %v2652_v10 = vor.u32 %v3800_v1, %v2651_v63  ;;  %v2891_v42 = vld [vmem:[%s5979_s3 + $0x208] sm:$0xf] }
  0xc7   :  { %1973 = vmatpush.bf16.msrb.mxu0 %v3176_v14  ;;  %1986 = vmatpush.bf16.msrb.mxu1 %v3304_v15  ;;  %v3848_v14 = vld [vmem:[%s5979_s3 + $0x1b4] sm:$0xf0]  ;;  %v3132_v15 = vor.u32 %v3920_v6, %v3131_v4  ;;  %v3068_v6 = vor.u32 %v3904_v61, %v3067_v60  ;;  %v3019_v44 = vld [vmem:[%s5979_s3 + $0x308] sm:$0xf] }
  0xc8   :  { %v2844_v21 = vor.u32 %v3848_v14, %v2843_v13  ;;  %v3832_v4 = vld [vmem:[%s5979_s3 + $0x134] sm:$0xf0]  ;;  %v2635_v13 = vld [vmem:[%s5979_s3 + $0x8] sm:$0xf] }
  0xc9   :  { %1998 = vmatpush.bf16.msrb.mxu2 %v3448_v22  ;;  %v2699_v22 = vld [vmem:[%s5979_s3 + $0x88] sm:$0xf]  ;;  %v3868_v9 = vld [vmem:[%s5979_s3 + $0x254] sm:$0xf0] }
  0xca   :  { %2011 = vmatpush.bf16.msrb.mxu3 %v3576_v24  ;;  %v3812_v24 = vld [vmem:[%s5979_s3 + $0x94] sm:$0xf0]  ;;  %v3499_v61 = vld [vmem:[%s5979_s3 + $0x6c8] sm:$0xf] }
  0xcb   :  { %1974 = vmatpush.bf16.msrb.mxu0 %v3160_v28  ;;  %1987 = vmatpush.bf16.msrb.mxu1 %v3288_v30  ;;  %v3116_v28 = vor.u32 %v3916_v20, %v3115_v19  ;;  %v2971_v30 = vld [vmem:[%s5979_s3 + $0x2a8] sm:$0xf]  ;;  %v2700_v32 = vor.u32 %v3812_v24, %v2699_v22  ;;  %v3828_v17 = vld [vmem:[%s5979_s3 + $0x114] sm:$0xf0] }
  0xcc   :  { %v2972_v39 = vor.u32 %v3880_v31, %v2971_v30  ;;  %v3259_v19 = vld [vmem:[%s5979_s3 + $0x4e8] sm:$0xf]  ;;  %v3952_v20 = vld [vmem:[%s5979_s3 + $0x4f4] sm:$0xf0]  ;;  %v2764_v31 = vor.u32 %v3828_v17, %v2763_v16 }
  0xcd   :  { %1999 = vmatpush.bf16.msrb.mxu2 %v3432_v38  ;;  %v3808_v38 = vld [vmem:[%s5979_s3 + $0x74] sm:$0xf0]  ;;  %v3627_v1 = vld [vmem:[%s5979_s3 + $0x7c8] sm:$0xf] }
  0xce   :  { %2012 = vmatpush.bf16.msrb.mxu3 %v3560_v43  ;;  %v3100_v43 = vor.u32 %v3912_v34, %v3099_v33  ;;  %v3984_v24 = vld [vmem:[%s5979_s3 + $0x5f4] sm:$0xf0]  ;;  %v3243_v33 = vld [vmem:[%s5979_s3 + $0x4c8] sm:$0xf] }
  0xcf   :  { %1975 = vmatpush.bf16.msrb.mxu0 %v3144_v47  ;;  %1988 = vmatpush.bf16.msrb.mxu1 %v3272_v23  ;;  %v2684_v47 = vor.u32 %v3808_v38, %v2683_v37  ;;  %v3083_v23 = vld [vmem:[%s5979_s3 + $0x388] sm:$0xf]  ;;  %v3864_v26 = vld [vmem:[%s5979_s3 + $0x234] sm:$0xf0] }
  0xd0   :  { %v3084_v56 = vor.u32 %v3908_v48, %v3083_v23  ;;  %v3896_v30 = vld [vmem:[%s5979_s3 + $0x334] sm:$0xf0]  ;;  %v3371_v38 = vld [vmem:[%s5979_s3 + $0x5c8] sm:$0xf] }
  0xd1   :  { %2000 = vmatpush.bf16.msrb.mxu2 %v3416_v54  ;;  %v2795_v54 = vld [vmem:[%s5979_s3 + $0x148] sm:$0xf]  ;;  %v3948_v37 = vld [vmem:[%s5979_s3 + $0x4d4] sm:$0xf0] }
  0xd2   :  { %2013 = vmatpush.bf16.msrb.mxu3 %v3544_v58  ;;  %1976 = vmatmul.bf16.vlgmr.msrb.gmra.mxu0 %v4750_v7  ;;  %v3872_v58 = vld [vmem:[%s5979_s3 + $0x274] sm:$0xf0]  ;;  %v2796_v62 = vor.u32 %v3836_v55, %v2795_v54  ;;  %v3244_v48 = vor.u32 %v3948_v37, %v3243_v33  ;;  %v3227_v54 = vld [vmem:[%s5979_s3 + $0x4a8] sm:$0xf] }
  0xd3   :  { %2020 = vmatpush.bf16.msra.mxu0 %v2748_v51  ;;  %2033 = vmatpush.bf16.msra.mxu1 %v2876_v52  ;;  %v2667_v51 = vld [vmem:[%s5979_s3 + $0x48] sm:$0xf]  ;;  %v3804_v52 = vld [vmem:[%s5979_s3 + $0x54] sm:$0xf0] }
  0xd4   :  { %1989 = vmatmul.bf16.vlgmr.msrb.gmra.mxu1 %v4761_v12  ;;  %v2668_v59 = vor.u32 %v3804_v52, %v2667_v51  ;;  %v3892_v46 = vld [vmem:[%s5979_s3 + $0x314] sm:$0xf0] }
  0xd5   :  { %2001 = vmatpush.bf16.msrb.mxu2 %v3400_v8  ;;  %v2923_v8 = vld [vmem:[%s5979_s3 + $0x248] sm:$0xf]  ;;  %v4016_v23 = vld [vmem:[%s5979_s3 + $0x6f4] sm:$0xf0] }
  0xd6   :  { %2014 = vmatpush.bf16.msrb.mxu3 %v3528_v49  ;;  %v3051_v49 = vld [vmem:[%s5979_s3 + $0x348] sm:$0xf]  ;;  %v4048_v51 = vld [vmem:[%s5979_s3 + $0x7f4] sm:$0xf0] }
  0xd7   :  { %2021 = vmatpush.bf16.msra.mxu0 %v2732_v2  ;;  %2034 = vmatpush.bf16.msra.mxu1 %v2860_v3  ;;  %v2940_v2 = vor.u32 %v3872_v58, %v2939_v57  ;;  %v2779_v3 = vld [vmem:[%s5979_s3 + $0x128] sm:$0xf]  ;;  %v3944_v55 = vld [vmem:[%s5979_s3 + $0x4b4] sm:$0xf0] }
  0xd8   :  { %2002 = vmatmul.bf16.vlgmr.msrb.gmra.mxu2 %v4798_v40  ;;  %v2780_v14 = vor.u32 %v3832_v4, %v2779_v3  ;;  %v3355_v58 = vld [vmem:[%s5979_s3 + $0x5a8] sm:$0xf]  ;;  %v3228_v63 = vor.u32 %v3944_v55, %v3227_v54  ;;  %v4040_v16 = vld [vmem:[%s5979_s3 + $0x7b4] sm:$0xf0] }
  0xd9   :  { %2046 = vmatpush.bf16.msra.mxu2 %v3004_v11  ;;  %2015 = vmatmul.bf16.vlgmr.msrb.gmra.mxu3 %v4809_v45  ;;  %v3900_v11 = vld [vmem:[%s5979_s3 + $0x354] sm:$0xf0]  ;;  %v3211_v4 = vld [vmem:[%s5979_s3 + $0x488] sm:$0xf] }
  0xda   :  { %2059 = vmatpush.bf16.msra.mxu3 %v3132_v15  ;;  %v3796_v15 = vld [vmem:[%s5979_s3 + $0x14] sm:$0xf0]  ;;  %v3052_v22 = vor.u32 %v3900_v11, %v3051_v49  ;;  %v3483_v11 = vld [vmem:[%s5979_s3 + $0x6a8] sm:$0xf] }
  0xdb   :  { %2022 = vmatpush.bf16.msra.mxu0 %v2716_v18  ;;  %2035 = vmatpush.bf16.msra.mxu1 %v2844_v21  ;;  %v2924_v18 = vor.u32 %v3868_v9, %v2923_v8  ;;  %v3387_v21 = vld [vmem:[%s5979_s3 + $0x5e8] sm:$0xf]  ;;  %v2636_v27 = vor.u32 %v3796_v15, %v2635_v13  ;;  %v4008_v13 = vld [vmem:[%s5979_s3 + $0x6b4] sm:$0xf0] }
  0xdc   :  { %v3388_v34 = vor.u32 %v3984_v24, %v3387_v21  ;;  %v3339_v9 = vld [vmem:[%s5979_s3 + $0x588] sm:$0xf]  ;;  %v3932_v33 = vld [vmem:[%s5979_s3 + $0x454] sm:$0xf0] }
  0xdd   :  { %2047 = vmatpush.bf16.msra.mxu2 %v2988_v25  ;;  %v2907_v25 = vld [vmem:[%s5979_s3 + $0x228] sm:$0xf]  ;;  %v3964_v37 = vld [vmem:[%s5979_s3 + $0x554] sm:$0xf0] }
  0xde   :  { %2060 = vmatpush.bf16.msra.mxu3 %v3116_v28  ;;  %v3035_v28 = vld [vmem:[%s5979_s3 + $0x328] sm:$0xf]  ;;  %v3996_v54 = vld [vmem:[%s5979_s3 + $0x654] sm:$0xf0] }
  0xdf   :  { %2023 = vmatpush.bf16.msra.mxu0 %v2700_v32  ;;  %2036 = vmatpush.bf16.msra.mxu1 %v2828_v36  ;;  %v3260_v32 = vor.u32 %v3952_v20, %v3259_v19  ;;  %v2908_v36 = vor.u32 %v3864_v26, %v2907_v25  ;;  %v3036_v41 = vor.u32 %v3896_v30, %v3035_v28  ;;  %v3611_v15 = vld [vmem:[%s5979_s3 + $0x7a8] sm:$0xf]  ;;  %v3936_v19 = vld [vmem:[%s5979_s3 + $0x474] sm:$0xf0] }
  0xe0   :  { %v3484_v20 = vor.u32 %v4008_v13, %v3483_v11  ;;  %v3323_v21 = vld [vmem:[%s5979_s3 + $0x568] sm:$0xf]  ;;  %v3612_v24 = vor.u32 %v4040_v16, %v3611_v15  ;;  %v4004_v26 = vld [vmem:[%s5979_s3 + $0x694] sm:$0xf0]  ;;  %v3818_v15 = vld [vmem:[%s5979_s3 + $0xcc] sm:$0xf] }
  0xe1   :  { %2048 = vmatpush.bf16.msra.mxu2 %v2972_v39  ;;  %v3980_v39 = vld [vmem:[%s5979_s3 + $0x5d4] sm:$0xf0]  ;;  %v3467_v25 = vld [vmem:[%s5979_s3 + $0x688] sm:$0xf] }
  0xe2   :  { %2061 = vmatpush.bf16.msra.mxu3 %v3100_v43  ;;  %v3860_v43 = vld [vmem:[%s5979_s3 + $0x214] sm:$0xf0]  ;;  %v3372_v52 = vor.u32 %v3980_v39, %v3371_v38  ;;  %v3595_v28 = vld [vmem:[%s5979_s3 + $0x788] sm:$0xf] }
  0xe3   :  { %2024 = vmatpush.bf16.msra.mxu0 %v2684_v47  ;;  %2037 = vmatpush.bf16.msra.mxu1 %v2812_v50  ;;  %v3515_v47 = vld [vmem:[%s5979_s3 + $0x6e8] sm:$0xf]  ;;  %v4036_v30 = vld [vmem:[%s5979_s3 + $0x794] sm:$0xf0] }
  0xe4   :  { %v3643_v50 = vld [vmem:[%s5979_s3 + $0x7e8] sm:$0xf]  ;;  %v3516_v57 = vor.u32 %v4016_v23, %v3515_v47  ;;  %v3596_v38 = vor.u32 %v4036_v30, %v3595_v28  ;;  %v3928_v23 = vld [vmem:[%s5979_s3 + $0x434] sm:$0xf0]  ;;  %v3005_v28 = vld [vmem:[%s5979_s3 + $0x2f8] sm:$0xf0] }
  0xe5   :  { %2049 = vmatpush.bf16.msra.mxu2 %v2956_v53  ;;  %v2892_v53 = vor.u32 %v3860_v43, %v2891_v42  ;;  %v3644_v60 = vor.u32 %v4048_v51, %v3643_v50  ;;  %v3451_v39 = vld [vmem:[%s5979_s3 + $0x668] sm:$0xf]  ;;  %v3960_v51 = vld [vmem:[%s5979_s3 + $0x534] sm:$0xf0] }
  0xe6   :  { %2062 = vmatpush.bf16.msra.mxu3 %v3084_v56  ;;  %v3020_v56 = vor.u32 %v3892_v46, %v3019_v44  ;;  %v3579_v43 = vld [vmem:[%s5979_s3 + $0x768] sm:$0xf]  ;;  %v4032_v44 = vld [vmem:[%s5979_s3 + $0x774] sm:$0xf0] }
  0xe7   :  { %2025 = vmatpush.bf16.msra.mxu0 %v2668_v59  ;;  %2038 = vmatpush.bf16.msra.mxu1 %v2796_v62  ;;  %v3976_v59 = vld [vmem:[%s5979_s3 + $0x5b4] sm:$0xf0]  ;;  %v3163_v47 = vld [vmem:[%s5979_s3 + $0x428] sm:$0xf] }
  0xe8   :  { %v4012_v62 = vld [vmem:[%s5979_s3 + $0x6d4] sm:$0xf0]  ;;  %v3356_v3 = vor.u32 %v3976_v59, %v3355_v58  ;;  %v3291_v50 = vld [vmem:[%s5979_s3 + $0x528] sm:$0xf]  ;;  %v3164_v55 = vor.u32 %v3928_v23, %v3163_v47  ;;  %v3914_v23 = vld [vmem:[%s5979_s3 + $0x3cc] sm:$0xf] }
  0xe9   :  { %2050 = vmatpush.bf16.msra.mxu2 %v2940_v2  ;;  %v4044_v2 = vld [vmem:[%s5979_s3 + $0x7d4] sm:$0xf0]  ;;  %v3500_v8 = vor.u32 %v4012_v62, %v3499_v61  ;;  %v3147_v58 = vld [vmem:[%s5979_s3 + $0x408] sm:$0xf]  ;;  %v3292_v59 = vor.u32 %v3960_v51, %v3291_v50  ;;  %v3810_v51 = vld [vmem:[%s5979_s3 + $0x8c] sm:$0xf] }
  0xea   :  { %2063 = vmatpush.bf16.msra.mxu3 %v3068_v6  ;;  %v3940_v6 = vld [vmem:[%s5979_s3 + $0x494] sm:$0xf0]  ;;  %v3628_v49 = vor.u32 %v4044_v2, %v3627_v1  ;;  %v3275_v61 = vld [vmem:[%s5979_s3 + $0x508] sm:$0xf]  ;;  %v3822_v1 = vld [vmem:[%s5979_s3 + $0xec] sm:$0xf] }
  0xeb   :  { %2026 = vmatpush.bf16.msra.mxu0 %v2652_v10  ;;  %2039 = vmatpush.bf16.msra.mxu1 %v2780_v14  ;;  %v3972_v10 = vld [vmem:[%s5979_s3 + $0x594] sm:$0xf0]  ;;  %v3212_v14 = vor.u32 %v3940_v6, %v3211_v4  ;;  %v2749_v2 = vld [vmem:[%s5979_s3 + $0xf8] sm:$0xf0] }
  0xec   :  { %v3340_v17 = vor.u32 %v3972_v10, %v3339_v9  ;;  %v3956_v62 = vld [vmem:[%s5979_s3 + $0x514] sm:$0xf0]  ;;  %v2877_v6 = vld [vmem:[%s5979_s3 + $0x1f8] sm:$0xf0] }
  0xed   :  { %2051 = vmatpush.bf16.msra.mxu2 %v2924_v18  ;;  %v3195_v18 = vld [vmem:[%s5979_s3 + $0x468] sm:$0xf]  ;;  %v3992_v9 = vld [vmem:[%s5979_s3 + $0x634] sm:$0xf0]  ;;  %v3276_v13 = vor.u32 %v3956_v62, %v3275_v61  ;;  %v3910_v62 = vld [vmem:[%s5979_s3 + $0x3ac] sm:$0xf] }
  0xee   :  { %2064 = vmatpush.bf16.msra.mxu3 %v3052_v22  ;;  %v3968_v22 = vld [vmem:[%s5979_s3 + $0x574] sm:$0xf0] }
  0xef   :  { %2027 = vmatpush.bf16.msra.mxu0 %v2636_v27  ;;  %2040 = vmatpush.bf16.msra.mxu1 %v2764_v31  ;;  %v3196_v27 = vor.u32 %v3936_v19, %v3195_v18  ;;  %v3324_v31 = vor.u32 %v3968_v22, %v3323_v21  ;;  %v4024_v11 = vld [vmem:[%s5979_s3 + $0x734] sm:$0xf0]  ;;  %v2733_v18 = vld [vmem:[%s5979_s3 + $0xd8] sm:$0xf0]  ;;  %v3850_v19 = vld [vmem:[%s5979_s3 + $0x1cc] sm:$0xf] }
  0xf0   :  { %v3403_v22 = vld [vmem:[%s5979_s3 + $0x608] sm:$0xf]  ;;  %v2736_v30 = vor.u32 %v3818_v15, %v2733_v18 }
  0xf1   :  { %2052 = vmatpush.bf16.msra.mxu2 %v2908_v36  ;;  %v3307_v36 = vld [vmem:[%s5979_s3 + $0x548] sm:$0xf] }
  0xf2   :  { %2065 = vmatpush.bf16.msra.mxu3 %v3036_v41  ;;  %2028 = vmatmul.bf16.vlgmr.msra.gmra.mxu0 %v4643_v0  ;;  %v4000_v41 = vld [vmem:[%s5979_s3 + $0x674] sm:$0xf0]  ;;  %v3308_v46 = vor.u32 %v3964_v37, %v3307_v36  ;;  %v3814_v36 = vld [vmem:[%s5979_s3 + $0xac] sm:$0xf]  ;;  %v2717_v37 = vld [vmem:[%s5979_s3 + $0xb8] sm:$0xf0] }
  0xf3   :  { %2072 = vmatpush.bf16.msrb.mxu0 %v3260_v32  ;;  %2085 = vmatpush.bf16.msrb.mxu1 %v3388_v34  ;;  %v3179_v32 = vld [vmem:[%s5979_s3 + $0x448] sm:$0xf]  ;;  %v3468_v34 = vor.u32 %v4004_v26, %v3467_v25  ;;  %v4020_v26 = vld [vmem:[%s5979_s3 + $0x714] sm:$0xf0]  ;;  %v2720_v47 = vor.u32 %v3814_v36, %v2717_v37  ;;  %v3830_v36 = vld [vmem:[%s5979_s3 + $0x12c] sm:$0xf] }
  0xf4   :  { %2041 = vmatmul.bf16.vlgmr.msra.gmra.mxu1 %v4652_v5  ;;  %v3180_v42 = vor.u32 %v3932_v33, %v3179_v32  ;;  %v3531_v25 = vld [vmem:[%s5979_s3 + $0x708] sm:$0xf]  ;;  %v3133_v32 = vld [vmem:[%s5979_s3 + $0x3f8] sm:$0xf0] }
  0xf5   :  { %2053 = vmatpush.bf16.msra.mxu2 %v2892_v53  ;;  %v3435_v53 = vld [vmem:[%s5979_s3 + $0x648] sm:$0xf]  ;;  %v2781_v37 = vld [vmem:[%s5979_s3 + $0x138] sm:$0xf0] }
  0xf6   :  { %2066 = vmatpush.bf16.msra.mxu3 %v3020_v56  ;;  %v3563_v56 = vld [vmem:[%s5979_s3 + $0x748] sm:$0xf] }
  0xf7   :  { %2073 = vmatpush.bf16.msrb.mxu0 %v3244_v48  ;;  %2086 = vmatpush.bf16.msrb.mxu1 %v3372_v52  ;;  %v3452_v48 = vor.u32 %v4000_v41, %v3451_v39  ;;  %v3580_v52 = vor.u32 %v4032_v44, %v3579_v43  ;;  %v3846_v41 = vld [vmem:[%s5979_s3 + $0x1ac] sm:$0xf] }
  0xf8   :  { %2054 = vmatmul.bf16.vlgmr.msra.gmra.mxu2 %v4687_v29  ;;  %v3882_v44 = vld [vmem:[%s5979_s3 + $0x2cc] sm:$0xf] }
  0xf9   :  { %2098 = vmatpush.bf16.msrb.mxu2 %v3516_v57  ;;  %2067 = vmatmul.bf16.vlgmr.msra.gmra.mxu3 %v4698_v35  ;;  %v4028_v57 = vld [vmem:[%s5979_s3 + $0x754] sm:$0xf0] }
  0xfa   :  { %2111 = vmatpush.bf16.msrb.mxu3 %v3644_v60  ;;  %v3924_v60 = vld [vmem:[%s5979_s3 + $0x414] sm:$0xf0]  ;;  %v3564_v4 = vor.u32 %v4028_v57, %v3563_v56 }
  0xfb   :  { %2074 = vmatpush.bf16.msrb.mxu0 %v3228_v63  ;;  %2087 = vmatpush.bf16.msrb.mxu1 %v3356_v3  ;;  %v3436_v63 = vor.u32 %v3996_v54, %v3435_v53  ;;  %v3854_v3 = vld [vmem:[%s5979_s3 + $0x1ec] sm:$0xf]  ;;  %v3148_v10 = vor.u32 %v3924_v60, %v3147_v58 }
  0xfc   :  { %v2880_v16 = vor.u32 %v3854_v3, %v2877_v6  ;;  %v3842_v54 = vld [vmem:[%s5979_s3 + $0x18c] sm:$0xf]  ;;  %v2685_v3 = vld [vmem:[%s5979_s3 + $0x78] sm:$0xf0] }
  0xfd   :  { %2099 = vmatpush.bf16.msrb.mxu2 %v3500_v8  ;;  %v3419_v8 = vld [vmem:[%s5979_s3 + $0x628] sm:$0xf]  ;;  %v3878_v58 = vld [vmem:[%s5979_s3 + $0x2ac] sm:$0xf] }
  0xfe   :  { %2112 = vmatpush.bf16.msrb.mxu3 %v3628_v49  ;;  %v3547_v49 = vld [vmem:[%s5979_s3 + $0x728] sm:$0xf]  ;;  %v3838_v6 = vld [vmem:[%s5979_s3 + $0x16c] sm:$0xf] }
  0xff   :  { %2075 = vmatpush.bf16.msrb.mxu0 %v3212_v14  ;;  %2088 = vmatpush.bf16.msrb.mxu1 %v3340_v17  ;;  %v2752_v14 = vor.u32 %v3822_v1, %v2749_v2  ;;  %v3420_v17 = vor.u32 %v3992_v9, %v3419_v8  ;;  %v3548_v21 = vor.u32 %v4024_v11, %v3547_v49  ;;  %v3806_v2 = vld [vmem:[%s5979_s3 + $0x6c] sm:$0xf]  ;;  %v2813_v8 = vld [vmem:[%s5979_s3 + $0x178] sm:$0xf0] }
 0x100   :  { %v2957_v49 = vld [vmem:[%s5979_s3 + $0x298] sm:$0xf0]  ;;  %v2688_v11 = vor.u32 %v3806_v2, %v2685_v3  ;;  %v2816_v15 = vor.u32 %v3838_v6, %v2813_v8  ;;  %v3894_v3 = vld [vmem:[%s5979_s3 + $0x32c] sm:$0xf] }
 0x101   :  { %2100 = vmatpush.bf16.msrb.mxu2 %v3484_v20  ;;  %v2861_v20 = vld [vmem:[%s5979_s3 + $0x1d8] sm:$0xf0] }
 0x102   :  { %2113 = vmatpush.bf16.msrb.mxu3 %v3612_v24  ;;  %v3988_v24 = vld [vmem:[%s5979_s3 + $0x614] sm:$0xf0]  ;;  %v2864_v33 = vor.u32 %v3850_v19, %v2861_v20  ;;  %v3834_v19 = vld [vmem:[%s5979_s3 + $0x14c] sm:$0xf]  ;;  %v2797_v20 = vld [vmem:[%s5979_s3 + $0x158] sm:$0xf0] }
 0x103   :  { %2076 = vmatpush.bf16.msrb.mxu0 %v3196_v27  ;;  %2089 = vmatpush.bf16.msrb.mxu1 %v3324_v31  ;;  %v3886_v27 = vld [vmem:[%s5979_s3 + $0x2ec] sm:$0xf] }
 0x104   :  { %v3918_v31 = vld [vmem:[%s5979_s3 + $0x3ec] sm:$0xf]  ;;  %v3008_v39 = vor.u32 %v3886_v27, %v3005_v28 }
 0x105   :  { %2101 = vmatpush.bf16.msrb.mxu2 %v3468_v34  ;;  %v3404_v34 = vor.u32 %v3988_v24, %v3403_v22  ;;  %v3136_v43 = vor.u32 %v3918_v31, %v3133_v32  ;;  %v3870_v24 = vld [vmem:[%s5979_s3 + $0x26c] sm:$0xf]  ;;  %v2800_v31 = vor.u32 %v3834_v19, %v2797_v20  ;;  %v3021_v20 = vld [vmem:[%s5979_s3 + $0x318] sm:$0xf0] }
 0x106   :  { %2114 = vmatpush.bf16.msrb.mxu3 %v3596_v38  ;;  %v3532_v38 = vor.u32 %v4020_v26, %v3531_v25  ;;  %v2941_v25 = vld [vmem:[%s5979_s3 + $0x278] sm:$0xf0]  ;;  %v3902_v28 = vld [vmem:[%s5979_s3 + $0x36c] sm:$0xf] }
 0x107   :  { %2077 = vmatpush.bf16.msrb.mxu0 %v3180_v42  ;;  %2090 = vmatpush.bf16.msrb.mxu1 %v3308_v46  ;;  %v2845_v42 = vld [vmem:[%s5979_s3 + $0x1b8] sm:$0xf0]  ;;  %v3798_v32 = vld [vmem:[%s5979_s3 + $0x2c] sm:$0xf] }
 0x108   :  { %v2989_v46 = vld [vmem:[%s5979_s3 + $0x2d8] sm:$0xf0]  ;;  %v2848_v50 = vor.u32 %v3846_v41, %v2845_v42 }
 0x109   :  { %2102 = vmatpush.bf16.msrb.mxu2 %v3452_v48  ;;  %v3117_v48 = vld [vmem:[%s5979_s3 + $0x3d8] sm:$0xf0]  ;;  %v2992_v53 = vor.u32 %v3882_v44, %v2989_v46  ;;  %v3898_v44 = vld [vmem:[%s5979_s3 + $0x34c] sm:$0xf] }
 0x10a   :  { %2115 = vmatpush.bf16.msrb.mxu3 %v3580_v52  ;;  %v2701_v52 = vld [vmem:[%s5979_s3 + $0x98] sm:$0xf0]  ;;  %v3120_v57 = vor.u32 %v3914_v23, %v3117_v48  ;;  %v2784_v48 = vor.u32 %v3830_v36, %v2781_v37  ;;  %v3974_v37 = vld [vmem:[%s5979_s3 + $0x5ac] sm:$0xf] }
 0x10b   :  { %2078 = vmatpush.bf16.msrb.mxu0 %v3164_v55  ;;  %2091 = vmatpush.bf16.msrb.mxu1 %v3292_v59  ;;  %v2829_v55 = vld [vmem:[%s5979_s3 + $0x198] sm:$0xf0]  ;;  %v2704_v61 = vor.u32 %v3810_v51, %v2701_v52  ;;  %v3826_v51 = vld [vmem:[%s5979_s3 + $0x10c] sm:$0xf] }
 0x10c   :  { %v2973_v59 = vld [vmem:[%s5979_s3 + $0x2b8] sm:$0xf0]  ;;  %v2832_v1 = vor.u32 %v3842_v54, %v2829_v55  ;;  %v3950_v54 = vld [vmem:[%s5979_s3 + $0x4ec] sm:$0xf] }
 0x10d   :  { %2103 = vmatpush.bf16.msrb.mxu2 %v3436_v63  ;;  %v5514_v56 = vpop.f32.mrf.mxu0  ;;  %v5523_v60 = vpop.f32.mrf.mxu1  ;;  %v3101_v63 = vld [vmem:[%s5979_s3 + $0x3b8] sm:$0xf0] }
 0x10e   :  { %2116 = vmatpush.bf16.msrb.mxu3 %v3564_v4  ;;  %v2976_v4 = vor.u32 %v3878_v58, %v2973_v59  ;;  %v3104_v9 = vor.u32 %v3910_v62, %v3101_v63  ;;  %v2925_v41 = vld [vmem:[%s5979_s3 + $0x258] sm:$0xf0]  ;;  %v3862_v62 = vld [vmem:[%s5979_s3 + $0x22c] sm:$0xf] }
 0x10f   :  { %2079 = vmatpush.bf16.msrb.mxu0 %v3148_v10  ;;  %2092 = vmatpush.bf16.msrb.mxu1 %v3276_v13  ;;  %v3874_v10 = vld [vmem:[%s5979_s3 + $0x28c] sm:$0xf]  ;;  %v3053_v46 = vld [vmem:[%s5979_s3 + $0x358] sm:$0xf0] }
 0x110   :  { %v3906_v13 = vld [vmem:[%s5979_s3 + $0x38c] sm:$0xf]  ;;  %v2960_v18 = vor.u32 %v3874_v10, %v2957_v49  ;;  %v2765_v52 = vld [vmem:[%s5979_s3 + $0x118] sm:$0xf0]  ;;  %v3056_v59 = vor.u32 %v3898_v44, %v3053_v46 }
 0x111   :  { %2104 = vmatpush.bf16.msrb.mxu2 %v3420_v17  ;;  %v2669_v17 = vld [vmem:[%s5979_s3 + $0x58] sm:$0xf0]  ;;  %v2768_v6 = vor.u32 %v3826_v51, %v2765_v52  ;;  %v4042_v46 = vld [vmem:[%s5979_s3 + $0x7cc] sm:$0xf] }
 0x112   :  { %2117 = vmatpush.bf16.msrb.mxu3 %v3548_v21  ;;  %2080 = vmatmul.bf16.vlgmr.msrb.gmra.mxu0 %v4750_v7  ;;  %v3261_v55 = vld [vmem:[%s5979_s3 + $0x4f8] sm:$0xf0]  ;;  %v3970_v52 = vld [vmem:[%s5979_s3 + $0x58c] sm:$0xf] }
 0x113   :  { %2124 = vmatpush.bf16.msra.mxu0 %v2752_v14  ;;  %2137 = vmatpush.bf16.msra.mxu1 %v2880_v16  ;;  %v3085_v14 = vld [vmem:[%s5979_s3 + $0x398] sm:$0xf0]  ;;  %v3802_v16 = vld [vmem:[%s5979_s3 + $0x4c] sm:$0xf]  ;;  %v3264_v8 = vor.u32 %v3950_v54, %v3261_v55 }
 0x114   :  { %2093 = vmatmul.bf16.vlgmr.msrb.gmra.mxu1 %v4761_v12  ;;  %v3088_v22 = vor.u32 %v3906_v13, %v3085_v14  ;;  %v2672_v27 = vor.u32 %v3802_v16, %v2669_v17  ;;  %v2909_v63 = vld [vmem:[%s5979_s3 + $0x238] sm:$0xf0]  ;;  %v3978_v13 = vld [vmem:[%s5979_s3 + $0x5cc] sm:$0xf] }
 0x115   :  { %2105 = vmatpush.bf16.msrb.mxu2 %v3404_v34  ;;  %v1823_v21 = vpop.f32.mrf.mxu0  ;;  %v1836_v26 = vpop.f32.mrf.mxu1  ;;  %v2944_v34 = vor.u32 %v3870_v24, %v2941_v25  ;;  %v2912_v49 = vor.u32 %v3862_v62, %v2909_v63  ;;  %v3373_v14 = vld [vmem:[%s5979_s3 + $0x5d8] sm:$0xf0]  ;;  %v3858_v16 = vld [vmem:[%s5979_s3 + $0x20c] sm:$0xf] }
 0x116   :  { %2118 = vmatpush.bf16.msrb.mxu3 %v3532_v38  ;;  %v2893_v17 = vld [vmem:[%s5979_s3 + $0x218] sm:$0xf0]  ;;  %v4014_v21 = vld [vmem:[%s5979_s3 + $0x6ec] sm:$0xf] }
 0x117   :  { %2125 = vmatpush.bf16.msra.mxu0 %v2736_v30  ;;  %2138 = vmatpush.bf16.msra.mxu1 %v2864_v33  ;;  %v3069_v30 = vld [vmem:[%s5979_s3 + $0x378] sm:$0xf0]  ;;  %v4046_v26 = vld [vmem:[%s5979_s3 + $0x7ec] sm:$0xf] }
 0x118   :  { %2106 = vmatmul.bf16.vlgmr.msrb.gmra.mxu2 %v4798_v40  ;;  %v2653_v33 = vld [vmem:[%s5979_s3 + $0x38] sm:$0xf0]  ;;  %v3072_v38 = vor.u32 %v3902_v28, %v3069_v30  ;;  %v3376_v28 = vor.u32 %v3978_v13, %v3373_v14  ;;  %v2896_v30 = vor.u32 %v3858_v16, %v2893_v17  ;;  %v4038_v63 = vld [vmem:[%s5979_s3 + $0x7ac] sm:$0xf] }
 0x119   :  { %2150 = vmatpush.bf16.msra.mxu2 %v3008_v39  ;;  %2119 = vmatmul.bf16.vlgmr.msrb.gmra.mxu3 %v4809_v45  ;;  %v3866_v39 = vld [vmem:[%s5979_s3 + $0x24c] sm:$0xf]  ;;  %v3597_v16 = vld [vmem:[%s5979_s3 + $0x798] sm:$0xf0] }
 0x11a   :  { %2163 = vmatpush.bf16.msra.mxu3 %v3136_v43  ;;  %v2656_v43 = vor.u32 %v3798_v32, %v2653_v33  ;;  %v3229_v32 = vld [vmem:[%s5979_s3 + $0x4b8] sm:$0xf0] }
 0x11b   :  { %2126 = vmatpush.bf16.msra.mxu0 %v2720_v47  ;;  %2139 = vmatpush.bf16.msra.mxu1 %v2848_v50  ;;  %v5598_v42 = vpop.f32.mrf.mxu2  ;;  %v3794_v47 = vld [vmem:[%s5979_s3 + $0xc] sm:$0xf]  ;;  %v5609_v23 = vpop.f32.mrf.mxu3  ;;  %v2637_v50 = vld [vmem:[%s5979_s3 + $0x18] sm:$0xf0] }
 0x11c   :  { %v2640_v2 = vor.u32 %v3794_v47, %v2637_v50  ;;  %v3213_v50 = vld [vmem:[%s5979_s3 + $0x498] sm:$0xf0] }
 0x11d   :  { %2151 = vmatpush.bf16.msra.mxu2 %v2992_v53  ;;  %v2928_v53 = vor.u32 %v3866_v39, %v2925_v41 }
 0x11e   :  { %2164 = vmatpush.bf16.msra.mxu3 %v3120_v57  ;;  %v3982_v57 = vld [vmem:[%s5979_s3 + $0x5ec] sm:$0xf]  ;;  %v5629_v58 = vpop.f32.mrf.mxu0 }
 0x11f   :  { %2127 = vmatpush.bf16.msra.mxu0 %v2704_v61  ;;  %2140 = vmatpush.bf16.msra.mxu1 %v2832_v1  ;;  %v3389_v61 = vld [vmem:[%s5979_s3 + $0x5f8] sm:$0xf0]  ;;  %v5640_v1 = vpop.f32.mrf.mxu1 }
 0x120   :  { %v3392_v10 = vor.u32 %v3982_v57, %v3389_v61  ;;  %v4006_v57 = vld [vmem:[%s5979_s3 + $0x6ac] sm:$0xf] }
 0x121   :  { %2152 = vmatpush.bf16.msra.mxu2 %v2976_v4  ;;  %v3037_v4 = vld [vmem:[%s5979_s3 + $0x338] sm:$0xf0] }
 0x122   :  { %2165 = vmatpush.bf16.msra.mxu3 %v3104_v9  ;;  %v3946_v9 = vld [vmem:[%s5979_s3 + $0x4cc] sm:$0xf] }
 0x123   :  { %2128 = vmatpush.bf16.msra.mxu0 %v2688_v11  ;;  %2141 = vmatpush.bf16.msra.mxu1 %v2816_v15  ;;  %v3245_v11 = vld [vmem:[%s5979_s3 + $0x4d8] sm:$0xf0]  ;;  %v3040_v15 = vor.u32 %v3894_v3, %v3037_v4  ;;  %v1849_v19 = vpop.f32.mrf.mxu2  ;;  %v1862_v24 = vpop.f32.mrf.mxu3  ;;  %v3934_v4 = vld [vmem:[%s5979_s3 + $0x46c] sm:$0xf] }
 0x124   :  { %v3248_v25 = vor.u32 %v3946_v9, %v3245_v11  ;;  %v3469_v11 = vld [vmem:[%s5979_s3 + $0x698] sm:$0xf0] }
 0x125   :  { %2153 = vmatpush.bf16.msra.mxu2 %v2960_v18  ;;  %v3890_v18 = vld [vmem:[%s5979_s3 + $0x30c] sm:$0xf]  ;;  %v3181_v19 = vld [vmem:[%s5979_s3 + $0x458] sm:$0xf0] }
 0x126   :  { %2166 = vmatpush.bf16.msra.mxu3 %v3088_v22  ;;  %v3517_v22 = vld [vmem:[%s5979_s3 + $0x6f8] sm:$0xf0]  ;;  %v1875_v33 = vpop.f32.mrf.mxu0 }
 0x127   :  { %2129 = vmatpush.bf16.msra.mxu0 %v2672_v27  ;;  %2142 = vmatpush.bf16.msra.mxu1 %v2800_v31  ;;  %v3645_v27 = vld [vmem:[%s5979_s3 + $0x7f8] sm:$0xf0]  ;;  %v3942_v31 = vld [vmem:[%s5979_s3 + $0x4ac] sm:$0xf]  ;;  %v3520_v36 = vor.u32 %v4014_v21, %v3517_v22  ;;  %v1888_v39 = vpop.f32.mrf.mxu1  ;;  %v5795_v33 = vld [vmem:[%s5981_s4] sm:$0xf] }
 0x128   :  { %v3648_v41 = vor.u32 %v4046_v26, %v3645_v27  ;;  %v3232_v44 = vor.u32 %v3942_v31, %v3229_v32  ;;  %v3962_v21 = vld [vmem:[%s5979_s3 + $0x54c] sm:$0xf]  ;;  %v3309_v22 = vld [vmem:[%s5979_s3 + $0x558] sm:$0xf0] }
 0x129   :  { %2154 = vmatpush.bf16.msra.mxu2 %v2944_v34  ;;  %v3024_v34 = vor.u32 %v3890_v18, %v3021_v20  ;;  %v3930_v18 = vld [vmem:[%s5979_s3 + $0x44c] sm:$0xf]  ;;  %v3453_v27 = vld [vmem:[%s5979_s3 + $0x678] sm:$0xf0] }
 0x12a   :  { %2167 = vmatpush.bf16.msra.mxu3 %v3072_v38  ;;  %v3357_v38 = vld [vmem:[%s5979_s3 + $0x5b8] sm:$0xf0]  ;;  %v3998_v26 = vld [vmem:[%s5979_s3 + $0x66c] sm:$0xf] }
 0x12b   :  { %2130 = vmatpush.bf16.msra.mxu0 %v2656_v43  ;;  %2143 = vmatpush.bf16.msra.mxu1 %v2784_v48  ;;  %v4010_v43 = vld [vmem:[%s5979_s3 + $0x6cc] sm:$0xf]  ;;  %v3360_v47 = vor.u32 %v3974_v37, %v3357_v38  ;;  %v5722_v54 = vpop.f32.mrf.mxu2  ;;  %v5730_v61 = vpop.f32.mrf.mxu3  ;;  %v3581_v32 = vld [vmem:[%s5979_s3 + $0x778] sm:$0xf0]  ;;  %v3456_v38 = vor.u32 %v3998_v26, %v3453_v27 }
 0x12c   :  { %v3938_v48 = vld [vmem:[%s5979_s3 + $0x48c] sm:$0xf]  ;;  %v3165_v37 = vld [vmem:[%s5979_s3 + $0x438] sm:$0xf0] }
 0x12d   :  { %2155 = vmatpush.bf16.msra.mxu2 %v2928_v53  ;;  %v3341_v53 = vld [vmem:[%s5979_s3 + $0x598] sm:$0xf0]  ;;  %v3216_v62 = vor.u32 %v3938_v48, %v3213_v50  ;;  %v4030_v31 = vld [vmem:[%s5979_s3 + $0x76c] sm:$0xf] }
 0x12e   :  { %2168 = vmatpush.bf16.msra.mxu3 %v3056_v59  ;;  %v3485_v59 = vld [vmem:[%s5979_s3 + $0x6b8] sm:$0xf0]  ;;  %v3344_v3 = vor.u32 %v3970_v52, %v3341_v53  ;;  %v3958_v39 = vld [vmem:[%s5979_s3 + $0x52c] sm:$0xf] }
 0x12f   :  { %2131 = vmatpush.bf16.msra.mxu0 %v2640_v2  ;;  %2144 = vmatpush.bf16.msra.mxu1 %v2768_v6  ;;  %v3613_v2 = vld [vmem:[%s5979_s3 + $0x7b8] sm:$0xf0]  ;;  %v3488_v6 = vor.u32 %v4006_v57, %v3485_v59  ;;  %v5752_v9 = vpop.f32.mrf.mxu0  ;;  %v4026_v50 = vld [vmem:[%s5979_s3 + $0x74c] sm:$0xf] }
 0x130   :  { %v3922_v53 = vld [vmem:[%s5979_s3 + $0x40c] sm:$0xf] }
 0x131   :  { %2156 = vmatpush.bf16.msra.mxu2 %v2912_v49  ;;  %v4002_v49 = vld [vmem:[%s5979_s3 + $0x68c] sm:$0xf]  ;;  %v5760_v13 = vpop.f32.mrf.mxu1 }
 0x132   :  { %2169 = vmatpush.bf16.msra.mxu3 %v3040_v15  ;;  %2132 = vmatmul.bf16.vlgmr.msra.gmra.mxu0 %v4643_v0  ;;  %v3501_v0 = vld [vmem:[%s5979_s3 + $0x6d8] sm:$0xf0]  ;;  %v4034_v15 = vld [vmem:[%s5979_s3 + $0x78c] sm:$0xf]  ;;  %v3472_v20 = vor.u32 %v4002_v49, %v3469_v11 }
 0x133   :  { %2176 = vmatpush.bf16.msrb.mxu0 %v3264_v8  ;;  %2189 = vmatpush.bf16.msrb.mxu1 %v3392_v10  ;;  %v3504_v51 = vor.u32 %v4010_v43, %v3501_v0  ;;  %v3966_v8 = vld [vmem:[%s5979_s3 + $0x56c] sm:$0xf]  ;;  %v3616_v10 = vor.u32 %v4038_v63, %v3613_v2  ;;  %v1901_v24 = vpop.f32.mrf.mxu2  ;;  %v3584_v0 = vor.u32 %v4030_v31, %v3581_v32  ;;  %v4056_v11 = vld [vmem:[%s5982_s5 + $0x38] sm:$0xff]  ;;  %v4061_v32 = vld [vmem:[%s5982_s5 + $0x60] sm:$0xff] }
 0x134   :  { %2145 = vmatmul.bf16.vlgmr.msra.gmra.mxu1 %v4652_v5  ;;  %v3629_v5 = vld [vmem:[%s5979_s3 + $0x7d8] sm:$0xf0]  ;;  %v3954_v59 = vld [vmem:[%s5979_s3 + $0x50c] sm:$0xf]  ;;  %v525_v24 = vperm.slane %v5795_v33, 1 }
 0x135   :  { %2157 = vmatpush.bf16.msra.mxu2 %v2896_v30  ;;  %v3632_v55 = vor.u32 %v4042_v46, %v3629_v5  ;;  %v3184_v30 = vor.u32 %v3930_v18, %v3181_v19  ;;  %v3437_v46 = vld [vmem:[%s5979_s3 + $0x658] sm:$0xf0]  ;;  %v524_v5 = vperm.slane %v5795_v33, 0  ;;  %v3990_v2 = vld [vmem:[%s5979_s3 + $0x62c] sm:$0xf] }
 0x136   :  { %2170 = vmatpush.bf16.msra.mxu3 %v3024_v34  ;;  %v3312_v34 = vor.u32 %v3962_v21, %v3309_v22  ;;  %v4018_v19 = vld [vmem:[%s5979_s3 + $0x70c] sm:$0xf]  ;;  %v4055_v21 = vld [vmem:[%s5982_s5 + $0x30] sm:$0xff] }
 0x137   :  { %2177 = vmatpush.bf16.msrb.mxu0 %v3248_v25  ;;  %2190 = vmatpush.bf16.msrb.mxu1 %v3376_v28  ;;  %v3600_v25 = vor.u32 %v4034_v15, %v3597_v16  ;;  %v1914_v28 = vpop.f32.mrf.mxu3  ;;  %v1927_v43 = vpop.f32.mrf.mxu0  ;;  %v3986_v16 = vld [vmem:[%s5979_s3 + $0x60c] sm:$0xf] }
 0x138   :  { %2158 = vmatmul.bf16.vlgmr.msra.gmra.mxu2 %v4687_v29  ;;  %v3197_v29 = vld [vmem:[%s5979_s3 + $0x478] sm:$0xf0]  ;;  %v4062_v31 = vld [vmem:[%s5982_s5 + $0x68] sm:$0xff] }
 0x139   :  { %2202 = vmatpush.bf16.msrb.mxu2 %v3520_v36  ;;  %2171 = vmatmul.bf16.vlgmr.msra.gmra.mxu3 %v4698_v35  ;;  %v3325_v35 = vld [vmem:[%s5979_s3 + $0x578] sm:$0xf0]  ;;  %v3200_v14 = vor.u32 %v3934_v4, %v3197_v29  ;;  %v3926_v36 = vld [vmem:[%s5979_s3 + $0x42c] sm:$0xf]  ;;  %v1822_v4 = vadd.f32 %v5514_v56, %v524_v5 }
 0x13a   :  { %2215 = vmatpush.bf16.msrb.mxu3 %v3648_v41  ;;  %v3328_v17 = vor.u32 %v3966_v8, %v3325_v35  ;;  %v3293_v41 = vld [vmem:[%s5979_s3 + $0x538] sm:$0xf0]  ;;  %v3168_v48 = vor.u32 %v3926_v36, %v3165_v37  ;;  %v4022_v35 = vld [vmem:[%s5979_s3 + $0x72c] sm:$0xf] }
 0x13b   :  { %2178 = vmatpush.bf16.msrb.mxu0 %v3232_v44  ;;  %2191 = vmatpush.bf16.msrb.mxu1 %v3360_v47  ;;  %v3994_v44 = vld [vmem:[%s5979_s3 + $0x64c] sm:$0xf]  ;;  %v1940_v47 = vpop.f32.mrf.mxu1  ;;  %v3296_v52 = vor.u32 %v3958_v39, %v3293_v41  ;;  %v1951_v29 = vpop.f32.mrf.mxu2  ;;  %v1835_v18 = vadd.f32 %v5523_v60, %v1822_v4  ;;  %v4063_v60 = vld [vmem:[%s5982_s5 + $0x70] sm:$0xff] }
 0x13c   :  { %v3440_v57 = vor.u32 %v3994_v44, %v3437_v46  ;;  %v4059_v41 = vld [vmem:[%s5982_s5 + $0x50] sm:$0xff] }
 0x13d   :  { %2203 = vmatpush.bf16.msrb.mxu2 %v3504_v51  ;;  %v3565_v51 = vld [vmem:[%s5979_s3 + $0x758] sm:$0xf0]  ;;  %v1848_v26 = vadd.f32 %v5598_v42, %v1835_v18 }
 0x13e   :  { %2216 = vmatpush.bf16.msrb.mxu3 %v3632_v55  ;;  %v3149_v55 = vld [vmem:[%s5979_s3 + $0x418] sm:$0xf0]  ;;  %v3568_v63 = vor.u32 %v4026_v50, %v3565_v51 }
 0x13f   :  { %2179 = vmatpush.bf16.msrb.mxu0 %v3216_v62  ;;  %2192 = vmatpush.bf16.msrb.mxu1 %v3344_v3  ;;  %v3277_v62 = vld [vmem:[%s5979_s3 + $0x518] sm:$0xf0]  ;;  %v3152_v8 = vor.u32 %v3922_v53, %v3149_v55  ;;  %v1861_v42 = vadd.f32 %v5609_v23, %v1848_v26 }
 0x140   :  { %v3421_v3 = vld [vmem:[%s5979_s3 + $0x638] sm:$0xf0]  ;;  %v3280_v49 = vor.u32 %v3954_v59, %v3277_v62  ;;  %v4071_v62 = vld [vmem:[%s5982_s5 + $0xb0] sm:$0xff] }
 0x141   :  { %2204 = vmatpush.bf16.msrb.mxu2 %v3488_v6  ;;  %v1964_v6 = vpop.f32.mrf.mxu3  ;;  %v3424_v56 = vor.u32 %v3990_v2, %v3421_v3  ;;  %v4070_v3 = vld [vmem:[%s5982_s5 + $0xa8] sm:$0xff] }
 0x142   :  { %2217 = vmatpush.bf16.msrb.mxu3 %v3616_v10  ;;  %v3549_v10 = vld [vmem:[%s5979_s3 + $0x738] sm:$0xf0] }
 0x143   :  { %2180 = vmatpush.bf16.msrb.mxu0 %v3200_v14  ;;  %2193 = vmatpush.bf16.msrb.mxu1 %v3328_v17  ;;  %v4064_v14 = vld [vmem:[%s5982_s5 + $0x78] sm:$0xff]  ;;  %v3552_v15 = vor.u32 %v4022_v35, %v3549_v10  ;;  %v1953_v27 = vpop.f32.mrf.mxu2  ;;  %v4067_v10 = vld [vmem:[%s5982_s5 + $0x90] sm:$0xff] }
 0x144   :  { %v3405_v17 = vld [vmem:[%s5979_s3 + $0x618] sm:$0xf0] }
 0x145   :  { %2205 = vmatpush.bf16.msrb.mxu2 %v3472_v20  ;;  %v3533_v20 = vld [vmem:[%s5979_s3 + $0x718] sm:$0xf0]  ;;  %v3408_v22 = vor.u32 %v3986_v16, %v3405_v17  ;;  %v4065_v16 = vld [vmem:[%s5982_s5 + $0x80] sm:$0xff]  ;;  %v526_v17 = vperm.slane %v5795_v33, 2 }
 0x146   :  { %2218 = vmatpush.bf16.msrb.mxu3 %v3600_v25  ;;  %v3536_v25 = vor.u32 %v4018_v19, %v3533_v20 }
 0x147   :  { %2181 = vmatpush.bf16.msrb.mxu0 %v3184_v30  ;;  %2194 = vmatpush.bf16.msrb.mxu1 %v3312_v34  ;;  %v4054_v30 = vld [vmem:[%s5982_s5 + $0x28] sm:$0xff] }
 0x149   :  { %2206 = vmatpush.bf16.msrb.mxu2 %v3456_v38  ;;  %v1966_v28 = vpop.f32.mrf.mxu3 }
 0x14a   :  { %2219 = vmatpush.bf16.msrb.mxu3 %v3584_v0 }
 0x14b   :  { %2182 = vmatpush.bf16.msrb.mxu0 %v3168_v48  ;;  %2195 = vmatpush.bf16.msrb.mxu1 %v3296_v52  ;;  %v4072_v48 = vld [vmem:[%s5982_s5 + $0xb8] sm:$0xff]  ;;  %v4049_v52 = vld [vmem:[%s5982_s5] sm:$0xff] }
 0x14d   :  { %2207 = vmatpush.bf16.msrb.mxu2 %v3440_v57 }
 0x14e   :  { %2220 = vmatpush.bf16.msrb.mxu3 %v3568_v63 }
 0x14f   :  { %2183 = vmatpush.bf16.msrb.mxu0 %v3152_v8  ;;  %2196 = vmatpush.bf16.msrb.mxu1 %v3280_v49  ;;  %v1977_v36 = vpop.f32.mrf.mxu0  ;;  %v4068_v8 = vld [vmem:[%s5982_s5 + $0x98] sm:$0xff] }
 0x151   :  { %2208 = vmatpush.bf16.msrb.mxu2 %v3424_v56  ;;  %v1990_v37 = vpop.f32.mrf.mxu1  ;;  %v4066_v56 = vld [vmem:[%s5982_s5 + $0x88] sm:$0xff] }
 0x152   :  { %2221 = vmatpush.bf16.msrb.mxu3 %v3552_v15  ;;  %2184 = vmatmul.bf16.vlgmr.msrb.gmra.mxu0 %v4750_v7  ;;  %v1926_v7 = vadd.f32 %v5752_v9, %v525_v24  ;;  %v1874_v9 = vadd.f32 %v5629_v58, %v1861_v42  ;;  %v4051_v58 = vld [vmem:[%s5982_s5 + $0x10] sm:$0xff] }
 0x153   :  { %2496 = vmatpush.bf16.msra.mxu0 %v4056_v11  ;;  %2509 = vmatpush.bf16.msra.mxu1 %v4064_v14 }
 0x154   :  { %2197 = vmatmul.bf16.vlgmr.msrb.gmra.mxu1 %v4761_v12  ;;  %v4053_v12 = vld [vmem:[%s5982_s5 + $0x20] sm:$0xff]  ;;  %v1939_v34 = vadd.f32 %v5760_v13, %v1926_v7  ;;  %v1887_v38 = vadd.f32 %v5640_v1, %v1874_v9  ;;  %v4050_v1 = vld [vmem:[%s5982_s5 + $0x8] sm:$0xff]  ;;  %v4080_v7 = vld [vmem:[%s5982_s5 + $0xf8] sm:$0xff] }
 0x155   :  { %2209 = vmatpush.bf16.msrb.mxu2 %v3408_v22  ;;  %v4079_v9 = vld [vmem:[%s5982_s5 + $0xf0] sm:$0xff] }
 0x156   :  { %2222 = vmatpush.bf16.msrb.mxu3 %v3536_v25  ;;  %v1952_v23 = vadd.f32 %v1951_v29, %v1939_v34  ;;  %v1900_v13 = vadd.f32 %v5722_v54, %v1887_v38  ;;  %v4058_v54 = vld [vmem:[%s5982_s5 + $0x48] sm:$0xff]  ;;  %v4069_v29 = vld [vmem:[%s5982_s5 + $0xa0] sm:$0xff] }
 0x157   :  { %2497 = vmatpush.bf16.msra.mxu0 %v4055_v21  ;;  %2510 = vmatpush.bf16.msra.mxu1 %v4063_v60  ;;  %v1979_v0 = vpop.f32.mrf.mxu0 }
 0x158   :  { %2210 = vmatmul.bf16.vlgmr.msrb.gmra.mxu2 %v4798_v40  ;;  %v4052_v40 = vld [vmem:[%s5982_s5 + $0x18] sm:$0xff]  ;;  %v1965_v39 = vadd.f32 %v1964_v6, %v1952_v23  ;;  %v1913_v46 = vadd.f32 %v5730_v61, %v1900_v13  ;;  %v4057_v61 = vld [vmem:[%s5982_s5 + $0x40] sm:$0xff]  ;;  %v4075_v13 = vld [vmem:[%s5982_s5 + $0xd0] sm:$0xff] }
 0x159   :  { %2223 = vmatmul.bf16.vlgmr.msrb.gmra.mxu3 %v4809_v45  ;;  %v4060_v45 = vld [vmem:[%s5982_s5 + $0x58] sm:$0xff]  ;;  %v1992_v44 = vpop.f32.mrf.mxu1  ;;  %2522 = vmatpush.bf16.msra.mxu2 %v4072_v48  ;;  %v4074_v0 = vld [vmem:[%s5982_s5 + $0xc8] sm:$0xff] }
 0x15a   :  { %v1978_v43 = vadd.f32 %v1977_v36, %v1965_v39  ;;  %v2228_v53 = vmax.f32 %v1913_v46, 0.0  ;;  %2535 = vmatpush.bf16.msra.mxu3 %v4080_v7  ;;  %v4076_v39 = vld [vmem:[%s5982_s5 + $0xd8] sm:$0xff]  ;;  %v4073_v46 = vld [vmem:[%s5982_s5 + $0xc0] sm:$0xff] }
 0x15b   :  { %2498 = vmatpush.bf16.msra.mxu0 %v4054_v30  ;;  %2511 = vmatpush.bf16.msra.mxu1 %v4062_v31  ;;  %v2003_v47 = vpop.f32.mrf.mxu2 }
 0x15c   :  { %v1991_v5 = vadd.f32 %v1990_v37, %v1978_v43  ;;  %v2016_v51 = vpop.f32.mrf.mxu3  ;;  %v2232_v59 = vpack.c.bf16 %v2228_v53, %v2228_v53  ;;  %v4078_v37 = vld [vmem:[%s5982_s5 + $0xe8] sm:$0xff] }
 0x15d   :  { %2523 = vmatpush.bf16.msra.mxu2 %v4071_v62 }
 0x15e   :  { %v2004_v50 = vadd.f32 %v2003_v47, %v1991_v5  ;;  %2536 = vmatpush.bf16.msra.mxu3 %v4079_v9 }
 0x15f   :  { %2499 = vmatpush.bf16.msra.mxu0 %v4053_v12  ;;  %2512 = vmatpush.bf16.msra.mxu1 %v4061_v32 }
 0x160   :  { %v2017_v55 = vadd.f32 %v2016_v51, %v2004_v50 }
 0x161   :  { %2524 = vmatpush.bf16.msra.mxu2 %v4070_v3 }
 0x162   :  { %v2229_v57 = vmax.f32 %v2017_v55, 0.0  ;;  %2537 = vmatpush.bf16.msra.mxu3 %v4078_v37 }
 0x163   :  { %2500 = vmatpush.bf16.msra.mxu0 %v4052_v40  ;;  %2513 = vmatpush.bf16.msra.mxu1 %v4060_v45  ;;  %v2005_v2 = vpop.f32.mrf.mxu2  ;;  %v4077_v45 = vld [vmem:[%s5982_s5 + $0xe0] sm:$0xff] }
 0x164   :  { %v2233_v63 = vpack.c.bf16 %v2229_v57, %v2229_v57  ;;  %v2018_v4 = vpop.f32.mrf.mxu3 }
 0x165   :  { %2525 = vmatpush.bf16.msra.mxu2 %v4069_v29 }
 0x166   :  { %2538 = vmatpush.bf16.msra.mxu3 %v4077_v45 }
 0x167   :  { %2501 = vmatpush.bf16.msra.mxu0 %v4051_v58  ;;  %2514 = vmatpush.bf16.msra.mxu1 %v4059_v41 }
 0x169   :  { %2526 = vmatpush.bf16.msra.mxu2 %v4068_v8 }
 0x16a   :  { %2539 = vmatpush.bf16.msra.mxu3 %v4076_v39 }
 0x16b   :  { %2502 = vmatpush.bf16.msra.mxu0 %v4050_v1  ;;  %2515 = vmatpush.bf16.msra.mxu1 %v4058_v54  ;;  %v527_v54 = vperm.slane %v5795_v33, 3 }
 0x16d   :  { %2527 = vmatpush.bf16.msra.mxu2 %v4067_v10 }
 0x16e   :  { %2540 = vmatpush.bf16.msra.mxu3 %v4075_v13 }
 0x16f   :  { %2503 = vmatpush.bf16.msra.mxu0 %v4049_v52  ;;  %2516 = vmatpush.bf16.msra.mxu1 %v4057_v61  ;;  %v2029_v6 = vpop.f32.mrf.mxu0 }
 0x170   :  { %v2030_v20 = vadd.f32 %v2029_v6, %v526_v17 }
 0x171   :  { %v2042_v35 = vpop.f32.mrf.mxu1  ;;  %2528 = vmatpush.bf16.msra.mxu2 %v4066_v56 }
 0x172   :  { %2504 = vmatmul.bf16.vlgmr.msra.gmra.mxu0 %v2232_v59  ;;  %2517 = vmatmul.bf16.vlgmr.msra.gmra.mxu1 %v2233_v63  ;;  %v2043_v21 = vadd.f32 %v2042_v35, %v2030_v20  ;;  %v4081_v35 = vld [vmem:[%s5983_s6] ss:$0 sm:$0xff] }
 0x173   :  { %2541 = vmatpush.bf16.msra.mxu3 %v4074_v0 }
 0x175   :  { %2529 = vmatpush.bf16.msra.mxu2 %v4065_v16 }
 0x177   :  { %v2031_v49 = vpop.f32.mrf.mxu0  ;;  %2542 = vmatpush.bf16.msra.mxu3 %v4073_v46 }
 0x179   :  { %v2044_v11 = vpop.f32.mrf.mxu1 }
 0x17b   :  { %v2055_v14 = vpop.f32.mrf.mxu2 }
 0x17c   :  { %v2068_v15 = vpop.f32.mrf.mxu3  ;;  %v2056_v60 = vadd.f32 %v2055_v14, %v2043_v21 }
 0x17e   :  { %v2069_v25 = vadd.f32 %v2068_v15, %v2056_v60 }
 0x183   :  { %v2057_v18 = vpop.f32.mrf.mxu2 }
 0x184   :  { %v2070_v19 = vpop.f32.mrf.mxu3 }
 0x18f   :  { %v2081_v22 = vpop.f32.mrf.mxu0 }
 0x190   :  { %v2082_v26 = vadd.f32 %v2081_v22, %v2069_v25 }
 0x191   :  { %v2094_v24 = vpop.f32.mrf.mxu1 }
 0x192   :  { %v2095_v30 = vadd.f32 %v2094_v24, %v2082_v26 }
 0x197   :  { %v2083_v27 = vpop.f32.mrf.mxu0 }
 0x199   :  { %v2096_v28 = vpop.f32.mrf.mxu1 }
 0x19b   :  { %v2107_v31 = vpop.f32.mrf.mxu2 }
 0x19c   :  { %v2108_v42 = vadd.f32 %v2107_v31, %v2095_v30  ;;  %v2120_v12 = vpop.f32.mrf.mxu3 }
 0x19e   :  { %v2121_v32 = vadd.f32 %v2120_v12, %v2108_v42 }
 0x1a0   :  { %v2230_v34 = vmax.f32 %v2121_v32, 0.0 }
 0x1a2   :  { %v2234_v36 = vpack.c.bf16 %v2230_v34, %v2230_v34 }
 0x1a3   :  { %v2109_v23 = vpop.f32.mrf.mxu2 }
 0x1a4   :  { %v2122_v40 = vpop.f32.mrf.mxu3  ;;  %2530 = vmatmul.bf16.vlgmr.msra.gmra.mxu2 %v2234_v36 }
 0x1af   :  { %v2133_v38 = vpop.f32.mrf.mxu0 }
 0x1b0   :  { %v2134_v48 = vadd.f32 %v2133_v38, %v527_v54 }
 0x1b1   :  { %v2146_v58 = vpop.f32.mrf.mxu1 }
 0x1b2   :  { %v2147_v50 = vadd.f32 %v2146_v58, %v2134_v48 }
 0x1b7   :  { %v2135_v41 = vpop.f32.mrf.mxu0 }
 0x1b9   :  { %v2148_v43 = vpop.f32.mrf.mxu1 }
 0x1bb   :  { %v2159_v44 = vpop.f32.mrf.mxu2 }
 0x1bc   :  { %v2172_v1 = vpop.f32.mrf.mxu3  ;;  %v2160_v52 = vadd.f32 %v2159_v44, %v2147_v50 }
 0x1be   :  { %v2173_v61 = vadd.f32 %v2172_v1, %v2160_v52 }
 0x1c3   :  { %v2161_v5 = vpop.f32.mrf.mxu2 }
 0x1c4   :  { %v2174_v47 = vpop.f32.mrf.mxu3 }
 0x1cf   :  { %v2185_v51 = vpop.f32.mrf.mxu0 }
 0x1d0   :  { %v2186_v55 = vadd.f32 %v2185_v51, %v2173_v61 }
 0x1d1   :  { %v2198_v53 = vpop.f32.mrf.mxu1 }
 0x1d2   :  { %v2199_v62 = vadd.f32 %v2198_v53, %v2186_v55 }
 0x1d7   :  { %v2187_v57 = vpop.f32.mrf.mxu0 }
 0x1d9   :  { %v2200_v59 = vpop.f32.mrf.mxu1 }
 0x1db   :  { %v2211_v63 = vpop.f32.mrf.mxu2 }
 0x1dc   :  { %v2212_v2 = vadd.f32 %v2211_v63, %v2199_v62  ;;  %v2224_v3 = vpop.f32.mrf.mxu3 }
 0x1de   :  { %v2225_v4 = vadd.f32 %v2224_v3, %v2212_v2 }
 0x1e0   :  { %v2231_v29 = vmax.f32 %v2225_v4, 0.0 }
 0x1e2   :  { %v2235_v6 = vpack.c.bf16 %v2231_v29, %v2231_v29 }
 0x1e3   :  { %v2213_v8 = vpop.f32.mrf.mxu2 }
 0x1e4   :  { %v2226_v33 = vpop.f32.mrf.mxu3  ;;  %2543 = vmatmul.bf16.vlgmr.msra.gmra.mxu3 %v2235_v6 }
 0x1ef   :  { %v2505_v10 = vpop.f32.mrf.mxu0  ;;  %v2518_v11 = vpop.f32.mrf.mxu1 }
 0x1f0   :  { %v2506_v49 = vadd.f32 %v4081_v35, %v2505_v10 }
 0x1f2   :  { %v2519_v56 = vadd.f32 %v2518_v11, %v2506_v49 }
 0x1f7   :  { %v2507_v14 = vpop.f32.mrf.mxu0  ;;  %v2520_v15 = vpop.f32.mrf.mxu1 }
 0x227   :  { %v2531_v16 = vpop.f32.mrf.mxu2 }
 0x228   :  { %v2532_v18 = vadd.f32 %v2531_v16, %v2519_v56 }
 0x22f   :  { %v2533_v17 = vpop.f32.mrf.mxu2 }
 0x267   :  { %v2544_v19 = vpop.f32.mrf.mxu3 }
 0x268   :  { %v2545_v20 = vadd.f32 %v2544_v19, %v2532_v18 }
 0x26a   :  { %2548 = vst [vmem:[%s5984_s7] sm:$0xff] %v2545_v20 }
 0x26f   :  { %v2546_v21 = vpop.f32.mrf.mxu3 }

</bundles_post_ra>
